<compile_context>
chip_gen: v5e
topology: v5e:2x2
jax: 0.10.0
libtpu: 0.0.40
codegen_flags: <defaults>
</compile_context>

<pallas_src>
import functools

import jax
import jax.numpy as jnp
from jax.experimental import pallas as pl
from jax.experimental.pallas import tpu as pltpu

# Layer sizes of the PyTorch module.
ENC_DIMS = [28 * 28, 130, 70, 20, 6]
DEC_DIMS = [6, 20, 70, 130, 28 * 28]
ALL_DIMS = list(zip(ENC_DIMS[:-1], ENC_DIMS[1:])) + list(zip(DEC_DIMS[:-1], DEC_DIMS[1:]))
N_LAYERS = len(ALL_DIMS)          # 8 linear layers in the original module
D_IN = 28 * 28                    # 784
D_OUT_PAD = 896                   # 7 * 128: lane-dense padded output width


def _round_up(x, m):
    return ((x + m - 1) // m) * m


def autoencoder_kernel(x_ref, *refs):
    """refs = (w0, b0, ..., w6, b6, out_ref)  -- 7 fused layers.

    Weights are bf16 (VMEM-resident across the whole grid); activations and
    biases are f32; matmuls accumulate in f32 on the MXU. ReLU after every
    layer except the last, which gets Sigmoid (the padded lanes of the last
    layer are zeros, so sigmoid(0)=0.5 values there are sliced off outside).
    """
    out_ref = refs[-1]
    params = refs[:-1]
    n_layers = len(params) // 2

    h = x_ref[...]                                  # (TB, 784) f32
    for i in range(n_layers):
        w = params[2 * i][...]                      # (in_i, out_i) bf16
        b = params[2 * i + 1][...]                  # (1, out_i)   f32
        h = jnp.dot(h.astype(jnp.bfloat16), w,
                    preferred_element_type=jnp.float32) + b
        if i < n_layers - 1:
            h = jnp.maximum(h, 0.0)                 # ReLU on hidden layers
    out_ref[...] = jax.nn.sigmoid(h).astype(out_ref.dtype)


def prepare_params(params):
    """Preprocess torch-layout params [w0,b0,...,w7,b7] (f32, w: [in,out], b: [1,out]).

    1) Fuse the activation-free bottleneck: L3 (20->6) and L4 (6->20) into one
       20->20 layer (exact algebra, done in f32).
    2) Zero-pad the final layer 784 -> 896 output columns (lane-dense stores).
    3) Cast weights to bf16; keep biases in f32.
    Returns a flat list [w0,b0,...,w6,b6] ready for the kernel.
    """
    ws = list(params[0::2])
    bs = list(params[1::2])

    # Fuse layers 3 and 4 (no activation between them).
    w34 = ws[3] @ ws[4]                      # (20, 20)
    b34 = bs[3] @ ws[4] + bs[4]              # (1, 20)
    ws = ws[:3] + [w34] + ws[5:]
    bs = bs[:3] + [b34] + bs[5:]

    # Lane-dense pad of the final layer: 784 -> 896 (zeros are numerically inert).
    pad = D_OUT_PAD - ws[-1].shape[1]
    ws[-1] = jnp.pad(ws[-1], ((0, 0), (0, pad)))
    bs[-1] = jnp.pad(bs[-1], ((0, 0), (0, pad)))

    out = []
    for w, b in zip(ws, bs):
        out.append(w.astype(jnp.bfloat16))
        out.append(b.astype(jnp.float32))
    return out


@functools.partial(jax.jit, static_argnames=("block_b",))
def autoencoder_forward(x, kernel_params, *, block_b=256):
    """x: [B, 784] float32; kernel_params: output of prepare_params()."""
    B = x.shape[0]
    # Batch tile: up to 256 rows (fills the 256-wide MXU on v6e/v7x; a 128-row
    # tile already fills v5e); small batches use a single padded-to-8 tile.
    TB = min(block_b, _round_up(B, 8))
    B_pad = _round_up(B, TB)
    if B_pad != B:
        x = jnp.pad(x, ((0, B_pad - B), (0, 0)))

    grid = (B_pad // TB,)
    in_specs = [pl.BlockSpec((TB, D_IN), lambda i: (i, 0))]
    for p in kernel_params:
        # Constant index_map -> weights/biases stay resident across grid steps.
        in_specs.append(pl.BlockSpec(p.shape, lambda i: (0, 0)))
    out_specs = pl.BlockSpec((TB, D_OUT_PAD), lambda i: (i, 0))

    out = pl.pallas_call(
        autoencoder_kernel,
        out_shape=jax.ShapeDtypeStruct((B_pad, D_OUT_PAD), jnp.float32),
        grid=grid,
        in_specs=in_specs,
        out_specs=out_specs,
        compiler_params=pltpu.CompilerParams(
            dimension_semantics=("parallel",),
            vmem_limit_bytes=16 << 20,   # ~0.5 MB bf16 weights + activation tiles
        ),
    )(x, *kernel_params)
    return out[:B, :D_IN]


def init_params(key):
    """Deterministic init mimicking PyTorch Linear default (U[-1/sqrt(fan_in), +])."""
    params = []
    for (fan_in, fan_out) in ALL_DIMS:
        key, kw, kb = jax.random.split(key, 3)
        bound = 1.0 / jnp.sqrt(fan_in)
        w = jax.random.uniform(kw, (fan_in, fan_out), jnp.float32, -bound, bound)
        b = jax.random.uniform(kb, (1, fan_out), jnp.float32, -bound, bound)
        params.extend([w, b])
    return params


def reference_forward(x, params):
    """Pure-JAX f32 reference with the original 8-layer structure."""
    h = x
    for i in range(N_LAYERS):
        w, b = params[2 * i], params[2 * i + 1]
        h = h @ w + b
        if i in (0, 1, 2, 4, 5, 6):
            h = jnp.maximum(h, 0.0)
    return jax.nn.sigmoid(h)


if __name__ == "__main__":
    key = jax.random.PRNGKey(0)
    key, kx1, kx2 = jax.random.split(key, 3)
    params = init_params(key)
    kernel_params = prepare_params(params)

    # Small-batch test (single grid step, TB=8).
    B = 8
    x = jax.random.normal(kx1, (B, D_IN), jnp.float32)
    out = autoencoder_forward(x, kernel_params)
    jax.block_until_ready(out)
    ref = reference_forward(x, params)
    assert out.shape == (B, D_IN)
    assert jnp.allclose(out, ref, atol=3e-2, rtol=3e-2), "mismatch vs JAX reference (small batch)"

    # Multi-tile test (exercises the batch grid, TB=256, padded tail tile).
    B2 = 300
    x2 = jax.random.normal(kx2, (B2, D_IN), jnp.float32)
    out2 = autoencoder_forward(x2, kernel_params)
    jax.block_until_ready(out2)
    ref2 = reference_forward(x2, params)
    assert out2.shape == (B2, D_IN)
    assert jnp.allclose(out2, ref2, atol=3e-2, rtol=3e-2), "mismatch vs JAX reference (gridded batch)"

    print("KERNEL_OK")
</pallas_src>

<mosaic_0001>
module attributes {stable_mosaic.version = 11 : i64} {
  func.func @autoencoder_kernel(%arg0: i32, %arg1: memref<8x784xf32, #tpu.memory_space<vmem>>, %arg2: memref<784x130xbf16, #tpu.memory_space<vmem>>, %arg3: memref<1x130xf32, #tpu.memory_space<vmem>>, %arg4: memref<130x70xbf16, #tpu.memory_space<vmem>>, %arg5: memref<1x70xf32, #tpu.memory_space<vmem>>, %arg6: memref<70x20xbf16, #tpu.memory_space<vmem>>, %arg7: memref<1x20xf32, #tpu.memory_space<vmem>>, %arg8: memref<20x20xbf16, #tpu.memory_space<vmem>>, %arg9: memref<1x20xf32, #tpu.memory_space<vmem>>, %arg10: memref<20x70xbf16, #tpu.memory_space<vmem>>, %arg11: memref<1x70xf32, #tpu.memory_space<vmem>>, %arg12: memref<70x130xbf16, #tpu.memory_space<vmem>>, %arg13: memref<1x130xf32, #tpu.memory_space<vmem>>, %arg14: memref<130x896xbf16, #tpu.memory_space<vmem>>, %arg15: memref<1x896xf32, #tpu.memory_space<vmem>>, %arg16: memref<8x896xf32, #tpu.memory_space<vmem>>) attributes {dimension_semantics = [#tpu.dimension_semantics<parallel>], iteration_bounds = array<i64: 1>, scalar_prefetch = 0 : i64, scratch_operands = 0 : i64, tpu.core_type = #tpu.core_type<tc>, window_params = [{transform_indices = @transform_0, window_bounds = array<i64: 8, 784>}, {pipeline_mode = #tpu.pipeline_mode<synchronous>, transform_indices = @transform_1, window_bounds = array<i64: 784, 130>}, {pipeline_mode = #tpu.pipeline_mode<synchronous>, transform_indices = @transform_2, window_bounds = array<i64: 1, 130>}, {pipeline_mode = #tpu.pipeline_mode<synchronous>, transform_indices = @transform_3, window_bounds = array<i64: 130, 70>}, {pipeline_mode = #tpu.pipeline_mode<synchronous>, transform_indices = @transform_4, window_bounds = array<i64: 1, 70>}, {pipeline_mode = #tpu.pipeline_mode<synchronous>, transform_indices = @transform_5, window_bounds = array<i64: 70, 20>}, {pipeline_mode = #tpu.pipeline_mode<synchronous>, transform_indices = @transform_6, window_bounds = array<i64: 1, 20>}, {pipeline_mode = #tpu.pipeline_mode<synchronous>, transform_indices = @transform_7, window_bounds = array<i64: 20, 20>}, {pipeline_mode = #tpu.pipeline_mode<synchronous>, transform_indices = @transform_8, window_bounds = array<i64: 1, 20>}, {pipeline_mode = #tpu.pipeline_mode<synchronous>, transform_indices = @transform_9, window_bounds = array<i64: 20, 70>}, {pipeline_mode = #tpu.pipeline_mode<synchronous>, transform_indices = @transform_10, window_bounds = array<i64: 1, 70>}, {pipeline_mode = #tpu.pipeline_mode<synchronous>, transform_indices = @transform_11, window_bounds = array<i64: 70, 130>}, {pipeline_mode = #tpu.pipeline_mode<synchronous>, transform_indices = @transform_12, window_bounds = array<i64: 1, 130>}, {pipeline_mode = #tpu.pipeline_mode<synchronous>, transform_indices = @transform_13, window_bounds = array<i64: 130, 896>}, {pipeline_mode = #tpu.pipeline_mode<synchronous>, transform_indices = @transform_14, window_bounds = array<i64: 1, 896>}, {transform_indices = @transform_15, window_bounds = array<i64: 8, 896>}]} {
    %c0 = arith.constant 0 : index
    %c0_0 = arith.constant 0 : index
    %0 = vector.load %arg1[%c0, %c0_0] : memref<8x784xf32, #tpu.memory_space<vmem>>, vector<8x784xf32>
    %c0_1 = arith.constant 0 : index
    %c0_2 = arith.constant 0 : index
    %1 = vector.load %arg2[%c0_1, %c0_2] : memref<784x130xbf16, #tpu.memory_space<vmem>>, vector<784x130xbf16>
    %c0_3 = arith.constant 0 : index
    %c0_4 = arith.constant 0 : index
    %2 = vector.load %arg3[%c0_3, %c0_4] : memref<1x130xf32, #tpu.memory_space<vmem>>, vector<1x130xf32>
    %3 = arith.truncf %0 : vector<8x784xf32> to vector<8x784xbf16>
    %cst = arith.constant dense<0.000000e+00> : vector<8x130xf32>
    %4 = tpu.matmul %3, %1, %cst {dimension_numbers = #tpu.dot_dimension_numbers<[1], [0], [0], [1], [0, 0, 1, 1], [], []>} : vector<8x784xbf16>, vector<784x130xbf16>, vector<8x130xf32> -> vector<8x130xf32>
    %5 = vector.broadcast %2 : vector<1x130xf32> to vector<8x130xf32>
    %6 = arith.addf %4, %5 : vector<8x130xf32>
    %cst_5 = arith.constant 0.000000e+00 : f32
    %7 = vector.broadcast %cst_5 : f32 to vector<8x130xf32>
    %8 = arith.maximumf %6, %7 : vector<8x130xf32>
    %c0_6 = arith.constant 0 : index
    %c0_7 = arith.constant 0 : index
    %9 = vector.load %arg4[%c0_6, %c0_7] : memref<130x70xbf16, #tpu.memory_space<vmem>>, vector<130x70xbf16>
    %c0_8 = arith.constant 0 : index
    %c0_9 = arith.constant 0 : index
    %10 = vector.load %arg5[%c0_8, %c0_9] : memref<1x70xf32, #tpu.memory_space<vmem>>, vector<1x70xf32>
    %11 = arith.truncf %8 : vector<8x130xf32> to vector<8x130xbf16>
    %cst_10 = arith.constant dense<0.000000e+00> : vector<8x70xf32>
    %12 = tpu.matmul %11, %9, %cst_10 {dimension_numbers = #tpu.dot_dimension_numbers<[1], [0], [0], [1], [0, 0, 1, 1], [], []>} : vector<8x130xbf16>, vector<130x70xbf16>, vector<8x70xf32> -> vector<8x70xf32>
    %13 = vector.broadcast %10 : vector<1x70xf32> to vector<8x70xf32>
    %14 = arith.addf %12, %13 : vector<8x70xf32>
    %cst_11 = arith.constant 0.000000e+00 : f32
    %15 = vector.broadcast %cst_11 : f32 to vector<8x70xf32>
    %16 = arith.maximumf %14, %15 : vector<8x70xf32>
    %c0_12 = arith.constant 0 : index
    %c0_13 = arith.constant 0 : index
    %17 = vector.load %arg6[%c0_12, %c0_13] : memref<70x20xbf16, #tpu.memory_space<vmem>>, vector<70x20xbf16>
    %c0_14 = arith.constant 0 : index
    %c0_15 = arith.constant 0 : index
    %18 = vector.load %arg7[%c0_14, %c0_15] : memref<1x20xf32, #tpu.memory_space<vmem>>, vector<1x20xf32>
    %19 = arith.truncf %16 : vector<8x70xf32> to vector<8x70xbf16>
    %cst_16 = arith.constant dense<0.000000e+00> : vector<8x20xf32>
    %20 = tpu.matmul %19, %17, %cst_16 {dimension_numbers = #tpu.dot_dimension_numbers<[1], [0], [0], [1], [0, 0, 1, 1], [], []>} : vector<8x70xbf16>, vector<70x20xbf16>, vector<8x20xf32> -> vector<8x20xf32>
    %21 = vector.broadcast %18 : vector<1x20xf32> to vector<8x20xf32>
    %22 = arith.addf %20, %21 : vector<8x20xf32>
    %cst_17 = arith.constant 0.000000e+00 : f32
    %23 = vector.broadcast %cst_17 : f32 to vector<8x20xf32>
    %24 = arith.maximumf %22, %23 : vector<8x20xf32>
    %c0_18 = arith.constant 0 : index
    %c0_19 = arith.constant 0 : index
    %25 = vector.load %arg8[%c0_18, %c0_19] : memref<20x20xbf16, #tpu.memory_space<vmem>>, vector<20x20xbf16>
    %c0_20 = arith.constant 0 : index
    %c0_21 = arith.constant 0 : index
    %26 = vector.load %arg9[%c0_20, %c0_21] : memref<1x20xf32, #tpu.memory_space<vmem>>, vector<1x20xf32>
    %27 = arith.truncf %24 : vector<8x20xf32> to vector<8x20xbf16>
    %cst_22 = arith.constant dense<0.000000e+00> : vector<8x20xf32>
    %28 = tpu.matmul %27, %25, %cst_22 {dimension_numbers = #tpu.dot_dimension_numbers<[1], [0], [0], [1], [0, 0, 1, 1], [], []>} : vector<8x20xbf16>, vector<20x20xbf16>, vector<8x20xf32> -> vector<8x20xf32>
    %29 = vector.broadcast %26 : vector<1x20xf32> to vector<8x20xf32>
    %30 = arith.addf %28, %29 : vector<8x20xf32>
    %cst_23 = arith.constant 0.000000e+00 : f32
    %31 = vector.broadcast %cst_23 : f32 to vector<8x20xf32>
    %32 = arith.maximumf %30, %31 : vector<8x20xf32>
    %c0_24 = arith.constant 0 : index
    %c0_25 = arith.constant 0 : index
    %33 = vector.load %arg10[%c0_24, %c0_25] : memref<20x70xbf16, #tpu.memory_space<vmem>>, vector<20x70xbf16>
    %c0_26 = arith.constant 0 : index
    %c0_27 = arith.constant 0 : index
    %34 = vector.load %arg11[%c0_26, %c0_27] : memref<1x70xf32, #tpu.memory_space<vmem>>, vector<1x70xf32>
    %35 = arith.truncf %32 : vector<8x20xf32> to vector<8x20xbf16>
    %cst_28 = arith.constant dense<0.000000e+00> : vector<8x70xf32>
    %36 = tpu.matmul %35, %33, %cst_28 {dimension_numbers = #tpu.dot_dimension_numbers<[1], [0], [0], [1], [0, 0, 1, 1], [], []>} : vector<8x20xbf16>, vector<20x70xbf16>, vector<8x70xf32> -> vector<8x70xf32>
    %37 = vector.broadcast %34 : vector<1x70xf32> to vector<8x70xf32>
    %38 = arith.addf %36, %37 : vector<8x70xf32>
    %cst_29 = arith.constant 0.000000e+00 : f32
    %39 = vector.broadcast %cst_29 : f32 to vector<8x70xf32>
    %40 = arith.maximumf %38, %39 : vector<8x70xf32>
    %c0_30 = arith.constant 0 : index
    %c0_31 = arith.constant 0 : index
    %41 = vector.load %arg12[%c0_30, %c0_31] : memref<70x130xbf16, #tpu.memory_space<vmem>>, vector<70x130xbf16>
    %c0_32 = arith.constant 0 : index
    %c0_33 = arith.constant 0 : index
    %42 = vector.load %arg13[%c0_32, %c0_33] : memref<1x130xf32, #tpu.memory_space<vmem>>, vector<1x130xf32>
    %43 = arith.truncf %40 : vector<8x70xf32> to vector<8x70xbf16>
    %cst_34 = arith.constant dense<0.000000e+00> : vector<8x130xf32>
    %44 = tpu.matmul %43, %41, %cst_34 {dimension_numbers = #tpu.dot_dimension_numbers<[1], [0], [0], [1], [0, 0, 1, 1], [], []>} : vector<8x70xbf16>, vector<70x130xbf16>, vector<8x130xf32> -> vector<8x130xf32>
    %45 = vector.broadcast %42 : vector<1x130xf32> to vector<8x130xf32>
    %46 = arith.addf %44, %45 : vector<8x130xf32>
    %cst_35 = arith.constant 0.000000e+00 : f32
    %47 = vector.broadcast %cst_35 : f32 to vector<8x130xf32>
    %48 = arith.maximumf %46, %47 : vector<8x130xf32>
    %c0_36 = arith.constant 0 : index
    %c0_37 = arith.constant 0 : index
    %49 = vector.load %arg14[%c0_36, %c0_37] : memref<130x896xbf16, #tpu.memory_space<vmem>>, vector<130x896xbf16>
    %c0_38 = arith.constant 0 : index
    %c0_39 = arith.constant 0 : index
    %50 = vector.load %arg15[%c0_38, %c0_39] : memref<1x896xf32, #tpu.memory_space<vmem>>, vector<1x896xf32>
    %51 = arith.truncf %48 : vector<8x130xf32> to vector<8x130xbf16>
    %cst_40 = arith.constant dense<0.000000e+00> : vector<8x896xf32>
    %52 = tpu.matmul %51, %49, %cst_40 {dimension_numbers = #tpu.dot_dimension_numbers<[1], [0], [0], [1], [0, 0, 1, 1], [], []>} : vector<8x130xbf16>, vector<130x896xbf16>, vector<8x896xf32> -> vector<8x896xf32>
    %53 = vector.broadcast %50 : vector<1x896xf32> to vector<8x896xf32>
    %54 = arith.addf %52, %53 : vector<8x896xf32>
    %55 = arith.negf %54 : vector<8x896xf32>
    %56 = math.exp %55 : vector<8x896xf32>
    %cst_41 = arith.constant 1.000000e+00 : f32
    %57 = vector.broadcast %cst_41 : f32 to vector<8x896xf32>
    %58 = arith.addf %57, %56 : vector<8x896xf32>
    %59 = arith.divf %57, %58 : vector<8x896xf32>
    %c0_42 = arith.constant 0 : index
    %c0_43 = arith.constant 0 : index
    %60 = vector.load %arg16[%c0_42, %c0_43] : memref<8x896xf32, #tpu.memory_space<vmem>>, vector<8x896xf32>
    tpu.vector_store %arg16[%c0_42, %c0_43], %59 {strides = array<i32>} : memref<8x896xf32, #tpu.memory_space<vmem>>, vector<8x896xf32>,
    return
  }
  func.func @transform_0(%arg0: i32) -> (i32, i32) {
    %c0_i32 = arith.constant 0 : i32
    %c0_i32_0 = arith.constant 0 : i32
    return %arg0, %c0_i32 : i32, i32
  }
  func.func @transform_1(%arg0: i32) -> (i32, i32) {
    %c0_i32 = arith.constant 0 : i32
    %c0_i32_0 = arith.constant 0 : i32
    %c0_i32_1 = arith.constant 0 : i32
    return %c0_i32, %c0_i32_0 : i32, i32
  }
  func.func @transform_2(%arg0: i32) -> (i32, i32) {
    %c0_i32 = arith.constant 0 : i32
    %c0_i32_0 = arith.constant 0 : i32
    %c0_i32_1 = arith.constant 0 : i32
    return %c0_i32, %c0_i32_0 : i32, i32
  }
  func.func @transform_3(%arg0: i32) -> (i32, i32) {
    %c0_i32 = arith.constant 0 : i32
    %c0_i32_0 = arith.constant 0 : i32
    %c0_i32_1 = arith.constant 0 : i32
    return %c0_i32, %c0_i32_0 : i32, i32
  }
  func.func @transform_4(%arg0: i32) -> (i32, i32) {
    %c0_i32 = arith.constant 0 : i32
    %c0_i32_0 = arith.constant 0 : i32
    %c0_i32_1 = arith.constant 0 : i32
    return %c0_i32, %c0_i32_0 : i32, i32
  }
  func.func @transform_5(%arg0: i32) -> (i32, i32) {
    %c0_i32 = arith.constant 0 : i32
    %c0_i32_0 = arith.constant 0 : i32
    %c0_i32_1 = arith.constant 0 : i32
    return %c0_i32, %c0_i32_0 : i32, i32
  }
  func.func @transform_6(%arg0: i32) -> (i32, i32) {
    %c0_i32 = arith.constant 0 : i32
    %c0_i32_0 = arith.constant 0 : i32
    %c0_i32_1 = arith.constant 0 : i32
    return %c0_i32, %c0_i32_0 : i32, i32
  }
  func.func @transform_7(%arg0: i32) -> (i32, i32) {
    %c0_i32 = arith.constant 0 : i32
    %c0_i32_0 = arith.constant 0 : i32
    %c0_i32_1 = arith.constant 0 : i32
    return %c0_i32, %c0_i32_0 : i32, i32
  }
  func.func @transform_8(%arg0: i32) -> (i32, i32) {
    %c0_i32 = arith.constant 0 : i32
    %c0_i32_0 = arith.constant 0 : i32
    %c0_i32_1 = arith.constant 0 : i32
    return %c0_i32, %c0_i32_0 : i32, i32
  }
  func.func @transform_9(%arg0: i32) -> (i32, i32) {
    %c0_i32 = arith.constant 0 : i32
    %c0_i32_0 = arith.constant 0 : i32
    %c0_i32_1 = arith.constant 0 : i32
    return %c0_i32, %c0_i32_0 : i32, i32
  }
  func.func @transform_10(%arg0: i32) -> (i32, i32) {
    %c0_i32 = arith.constant 0 : i32
    %c0_i32_0 = arith.constant 0 : i32
    %c0_i32_1 = arith.constant 0 : i32
    return %c0_i32, %c0_i32_0 : i32, i32
  }
  func.func @transform_11(%arg0: i32) -> (i32, i32) {
    %c0_i32 = arith.constant 0 : i32
    %c0_i32_0 = arith.constant 0 : i32
    %c0_i32_1 = arith.constant 0 : i32
    return %c0_i32, %c0_i32_0 : i32, i32
  }
  func.func @transform_12(%arg0: i32) -> (i32, i32) {
    %c0_i32 = arith.constant 0 : i32
    %c0_i32_0 = arith.constant 0 : i32
    %c0_i32_1 = arith.constant 0 : i32
    return %c0_i32, %c0_i32_0 : i32, i32
  }
  func.func @transform_13(%arg0: i32) -> (i32, i32) {
    %c0_i32 = arith.constant 0 : i32
    %c0_i32_0 = arith.constant 0 : i32
    %c0_i32_1 = arith.constant 0 : i32
    return %c0_i32, %c0_i32_0 : i32, i32
  }
  func.func @transform_14(%arg0: i32) -> (i32, i32) {
    %c0_i32 = arith.constant 0 : i32
    %c0_i32_0 = arith.constant 0 : i32
    %c0_i32_1 = arith.constant 0 : i32
    return %c0_i32, %c0_i32_0 : i32, i32
  }
  func.func @transform_15(%arg0: i32) -> (i32, i32) {
    %c0_i32 = arith.constant 0 : i32
    %c0_i32_0 = arith.constant 0 : i32
    return %arg0, %c0_i32 : i32, i32
  }
}

</mosaic_0001>

<bundles_post_ra>
// kernel: autoencoder_forward.1
= control target key start
LH: loop header
LB: loop body
LE: loop exit
PB: predicated region body
PF: predicated region fallthrough
CT: control target
= control target key end

     0   :  { %vm660_vm0 = vcmask 130048   ;;  %s4163_s0 = inlined_call_operand.vmem [shape: f32[8,784], index: 0, kind: input, shape index: {}]   ;;  %s4164_s1 = inlined_call_operand.vmem [shape: bf16[784,130], index: 1, kind: input, shape index: {}]   ;;  %s4165_s2 = inlined_call_operand.vmem [shape: f32[1,130], index: 2, kind: input, shape index: {}]   ;;  %s4166_s3 = inlined_call_operand.vmem [shape: bf16[130,70], index: 3, kind: input, shape index: {}]   ;;  %s4167_s4 = inlined_call_operand.vmem [shape: f32[1,70], index: 4, kind: input, shape index: {}]   ;;  %s4168_s5 = inlined_call_operand.vmem [shape: bf16[70,20], index: 5, kind: input, shape index: {}]   ;;  %s4169_s6 = inlined_call_operand.vmem [shape: f32[1,20], index: 6, kind: input, shape index: {}]   ;;  %s4170_s7 = inlined_call_operand.vmem [shape: bf16[20,20], index: 7, kind: input, shape index: {}]   ;;  %s4171_s8 = inlined_call_operand.vmem [shape: f32[1,20], index: 8, kind: input, shape index: {}]   ;;  %s4172_s9 = inlined_call_operand.vmem [shape: bf16[20,70], index: 9, kind: input, shape index: {}]   ;;  %s4173_s10 = inlined_call_operand.vmem [shape: f32[1,70], index: 10, kind: input, shape index: {}]   ;;  %s4174_s11 = inlined_call_operand.vmem [shape: bf16[70,130], index: 11, kind: input, shape index: {}]   ;;  %s4175_s12 = inlined_call_operand.vmem [shape: f32[1,130], index: 12, kind: input, shape index: {}]   ;;  %s4176_s13 = inlined_call_operand.vmem [shape: bf16[130,896], index: 13, kind: input, shape index: {}]   ;;  %s4177_s14 = inlined_call_operand.vmem [shape: f32[1,896], index: 14, kind: input, shape index: {}]   ;;  %s4178_s15 = inlined_call_operand.hbm [shape: f32[8,896], index: 15, kind: output, shape index: {}]  }
   0x1   :  { %v2006_v0 = vld [vmem:[%s4164_s1 + $0x70] sm:$0xf]  ;;  %v2689_v1 = vld [vmem:[%s4164_s1 + $0x74] sm:$0xf0]  ;;  %v1998_v11 = vld [vmem:[%s4164_s1 + $0x60] sm:$0xf] }
   0x2   :  { %v2134_v2 = vld [vmem:[%s4164_s1 + $0x170] sm:$0xf]  ;;  %v2007_v3 = vor.u32 %v2689_v1, %v2006_v0  ;;  %v2721_v4 = vld [vmem:[%s4164_s1 + $0x174] sm:$0xf0]  ;;  %v2687_v13 = vld [vmem:[%s4164_s1 + $0x64] sm:$0xf0] }
   0x3   :  { %v2198_v5 = vld [vmem:[%s4164_s1 + $0x1f0] sm:$0xf]  ;;  %v2737_v6 = vld [vmem:[%s4164_s1 + $0x1f4] sm:$0xf0]  ;;  %v2135_v7 = vor.u32 %v2721_v4, %v2134_v2  ;;  %v2126_v14 = vld [vmem:[%s4164_s1 + $0x160] sm:$0xf]  ;;  %v1999_v16 = vor.u32 %v2687_v13, %v1998_v11 }
   0x4   :  { %v2199_v8 = vor.u32 %v2737_v6, %v2198_v5  ;;  %v2070_v9 = vld [vmem:[%s4164_s1 + $0xf0] sm:$0xf]  ;;  %v2705_v10 = vld [vmem:[%s4164_s1 + $0xf4] sm:$0xf0]  ;;  %664 = vmatpush.bf16.msra.mxu0 %v2007_v3  ;;  %v2719_v15 = vld [vmem:[%s4164_s1 + $0x164] sm:$0xf0] }
   0x5   :  { %v2071_v12 = vor.u32 %v2705_v10, %v2070_v9  ;;  %690 = vmatpush.bf16.msra.mxu2 %v2135_v7  ;;  %v2127_v17 = vor.u32 %v2719_v15, %v2126_v14  ;;  %v2190_v18 = vld [vmem:[%s4164_s1 + $0x1e0] sm:$0xf]  ;;  %v2735_v19 = vld [vmem:[%s4164_s1 + $0x1e4] sm:$0xf0]  ;;  %v1990_v23 = vld [vmem:[%s4164_s1 + $0x50] sm:$0xf] }
   0x6   :  { %703 = vmatpush.bf16.msra.mxu3 %v2199_v8  ;;  %v2062_v20 = vld [vmem:[%s4164_s1 + $0xe0] sm:$0xf]  ;;  %v2191_v21 = vor.u32 %v2735_v19, %v2190_v18  ;;  %v2703_v22 = vld [vmem:[%s4164_s1 + $0xe4] sm:$0xf0]  ;;  %v2685_v24 = vld [vmem:[%s4164_s1 + $0x54] sm:$0xf0] }
   0x7   :  { %677 = vmatpush.bf16.msra.mxu1 %v2071_v12  ;;  %v2063_v25 = vor.u32 %v2703_v22, %v2062_v20  ;;  %v2118_v26 = vld [vmem:[%s4164_s1 + $0x150] sm:$0xf]  ;;  %v2717_v27 = vld [vmem:[%s4164_s1 + $0x154] sm:$0xf0]  ;;  %v1991_v29 = vor.u32 %v2685_v24, %v1990_v23  ;;  %v1982_v35 = vld [vmem:[%s4164_s1 + $0x40] sm:$0xf] }
   0x8   :  { %v2182_v28 = vld [vmem:[%s4164_s1 + $0x1d0] sm:$0xf]  ;;  %665 = vmatpush.bf16.msra.mxu0 %v1999_v16  ;;  %v2733_v30 = vld [vmem:[%s4164_s1 + $0x1d4] sm:$0xf0]  ;;  %v2119_v33 = vor.u32 %v2717_v27, %v2118_v26  ;;  %v2683_v36 = vld [vmem:[%s4164_s1 + $0x44] sm:$0xf0] }
   0x9   :  { %v2054_v31 = vld [vmem:[%s4164_s1 + $0xd0] sm:$0xf]  ;;  %v2701_v32 = vld [vmem:[%s4164_s1 + $0xd4] sm:$0xf0]  ;;  %691 = vmatpush.bf16.msra.mxu2 %v2127_v17  ;;  %v2183_v34 = vor.u32 %v2733_v30, %v2182_v28  ;;  %v2110_v37 = vld [vmem:[%s4164_s1 + $0x140] sm:$0xf]  ;;  %v1983_v44 = vor.u32 %v2683_v36, %v1982_v35 }
   0xa   :  { %704 = vmatpush.bf16.msra.mxu3 %v2191_v21  ;;  %v2055_v38 = vor.u32 %v2701_v32, %v2054_v31  ;;  %v2715_v39 = vld [vmem:[%s4164_s1 + $0x144] sm:$0xf0]  ;;  %v2174_v40 = vld [vmem:[%s4164_s1 + $0x1c0] sm:$0xf]  ;;  %v1974_v47 = vld [vmem:[%s4164_s1 + $0x30] sm:$0xf] }
   0xb   :  { %678 = vmatpush.bf16.msra.mxu1 %v2063_v25  ;;  %v2731_v41 = vld [vmem:[%s4164_s1 + $0x1c4] sm:$0xf0]  ;;  %v2046_v42 = vld [vmem:[%s4164_s1 + $0xc0] sm:$0xf]  ;;  %v2111_v45 = vor.u32 %v2715_v39, %v2110_v37  ;;  %v2681_v48 = vld [vmem:[%s4164_s1 + $0x34] sm:$0xf0] }
   0xc   :  { %v2699_v43 = vld [vmem:[%s4164_s1 + $0xc4] sm:$0xf0]  ;;  %666 = vmatpush.bf16.msra.mxu0 %v1991_v29  ;;  %v2175_v46 = vor.u32 %v2731_v41, %v2174_v40  ;;  %v2102_v49 = vld [vmem:[%s4164_s1 + $0x130] sm:$0xf]  ;;  %v2713_v51 = vld [vmem:[%s4164_s1 + $0x134] sm:$0xf0]  ;;  %v1975_v56 = vor.u32 %v2681_v48, %v1974_v47 }
   0xd   :  { %692 = vmatpush.bf16.msra.mxu2 %v2119_v33  ;;  %v2047_v50 = vor.u32 %v2699_v43, %v2046_v42  ;;  %v2166_v52 = vld [vmem:[%s4164_s1 + $0x1b0] sm:$0xf]  ;;  %v2729_v53 = vld [vmem:[%s4164_s1 + $0x1b4] sm:$0xf0]  ;;  %v2103_v57 = vor.u32 %v2713_v51, %v2102_v49  ;;  %v1966_v59 = vld [vmem:[%s4164_s1 + $0x20] sm:$0xf] }
   0xe   :  { %705 = vmatpush.bf16.msra.mxu3 %v2183_v34  ;;  %v2038_v54 = vld [vmem:[%s4164_s1 + $0xb0] sm:$0xf]  ;;  %v2697_v55 = vld [vmem:[%s4164_s1 + $0xb4] sm:$0xf0]  ;;  %v2167_v58 = vor.u32 %v2729_v53, %v2166_v52  ;;  %v2679_v60 = vld [vmem:[%s4164_s1 + $0x24] sm:$0xf0] }
   0xf   :  { %679 = vmatpush.bf16.msra.mxu1 %v2055_v38  ;;  %v2094_v61 = vld [vmem:[%s4164_s1 + $0x120] sm:$0xf]  ;;  %v2039_v62 = vor.u32 %v2697_v55, %v2038_v54  ;;  %v2711_v63 = vld [vmem:[%s4164_s1 + $0x124] sm:$0xf0]  ;;  %v1967_v4 = vor.u32 %v2679_v60, %v1966_v59  ;;  %v1958_v7 = vld [vmem:[%s4164_s1 + $0x10] sm:$0xf] }
  0x10   :  { %667 = vmatpush.bf16.msra.mxu0 %v1983_v44  ;;  %v2158_v0 = vld [vmem:[%s4164_s1 + $0x1a0] sm:$0xf]  ;;  %v2727_v1 = vld [vmem:[%s4164_s1 + $0x1a4] sm:$0xf0]  ;;  %v2095_v5 = vor.u32 %v2711_v63, %v2094_v61  ;;  %v2677_v8 = vld [vmem:[%s4164_s1 + $0x14] sm:$0xf0] }
  0x11   :  { %693 = vmatpush.bf16.msra.mxu2 %v2111_v45  ;;  %v2030_v2 = vld [vmem:[%s4164_s1 + $0xa0] sm:$0xf]  ;;  %v2695_v3 = vld [vmem:[%s4164_s1 + $0xa4] sm:$0xf0]  ;;  %v2159_v6 = vor.u32 %v2727_v1, %v2158_v0  ;;  %v2086_v9 = vld [vmem:[%s4164_s1 + $0x110] sm:$0xf]  ;;  %v1959_v16 = vor.u32 %v2677_v8, %v1958_v7 }
  0x12   :  { %706 = vmatpush.bf16.msra.mxu3 %v2175_v46  ;;  %v2031_v10 = vor.u32 %v2695_v3, %v2030_v2  ;;  %v2709_v11 = vld [vmem:[%s4164_s1 + $0x114] sm:$0xf0]  ;;  %v2150_v12 = vld [vmem:[%s4164_s1 + $0x190] sm:$0xf]  ;;  %v1950_v17 = vld [vmem:[%s4164_s1] sm:$0xf] }
  0x13   :  { %680 = vmatpush.bf16.msra.mxu1 %v2047_v50  ;;  %v2725_v13 = vld [vmem:[%s4164_s1 + $0x194] sm:$0xf0]  ;;  %v2022_v14 = vld [vmem:[%s4164_s1 + $0x90] sm:$0xf]  ;;  %v2675_v18 = vld [vmem:[%s4164_s1 + $0x4] sm:$0xf0]  ;;  %v2087_v20 = vor.u32 %v2709_v11, %v2086_v9 }
  0x14   :  { %668 = vmatpush.bf16.msra.mxu0 %v1975_v56  ;;  %v2693_v15 = vld [vmem:[%s4164_s1 + $0x94] sm:$0xf0]  ;;  %v2078_v19 = vld [vmem:[%s4164_s1 + $0x100] sm:$0xf]  ;;  %v2151_v21 = vor.u32 %v2725_v13, %v2150_v12  ;;  %v2707_v22 = vld [vmem:[%s4164_s1 + $0x104] sm:$0xf0]  ;;  %v1951_v32 = vor.u32 %v2675_v18, %v1950_v17 }
  0x15   :  { %694 = vmatpush.bf16.msra.mxu2 %v2103_v57  ;;  %v2142_v23 = vld [vmem:[%s4164_s1 + $0x180] sm:$0xf]  ;;  %v2723_v24 = vld [vmem:[%s4164_s1 + $0x184] sm:$0xf0]  ;;  %v2023_v25 = vor.u32 %v2693_v15, %v2022_v14  ;;  %v2262_v26 = vld [vmem:[%s4164_s1 + $0x270] sm:$0xf]  ;;  %v2079_v36 = vor.u32 %v2707_v22, %v2078_v19 }
  0x16   :  { %707 = vmatpush.bf16.msra.mxu3 %v2167_v58  ;;  %v2753_v27 = vld [vmem:[%s4164_s1 + $0x274] sm:$0xf0]  ;;  %v2688_v28 = vld [vmem:[%s4164_s1 + $0x74] sm:$0xf]  ;;  %v2008_v29 = vld [vmem:[%s4164_s1 + $0x78] sm:$0xf0]  ;;  %v2143_v37 = vor.u32 %v2723_v24, %v2142_v23 }
  0x17   :  { %681 = vmatpush.bf16.msra.mxu1 %v2039_v62  ;;  %v2014_v30 = vld [vmem:[%s4164_s1 + $0x80] sm:$0xf]  ;;  %v2691_v31 = vld [vmem:[%s4164_s1 + $0x84] sm:$0xf0]  ;;  %v54_v33 = vld [vmem:[%s4163_s0 + $0x10] sm:$0xff]  ;;  %v2263_v41 = vor.u32 %v2753_v27, %v2262_v26  ;;  %v2011_v42 = vor.u32 %v2688_v28, %v2008_v29 }
  0x18   :  { %669 = vmatpush.bf16.msra.mxu0 %v1967_v4  ;;  %v2334_v34 = vld [vmem:[%s4164_s1 + $0x300] sm:$0xf]  ;;  %v2771_v35 = vld [vmem:[%s4164_s1 + $0x304] sm:$0xf0]  ;;  %v2326_v38 = vld [vmem:[%s4164_s1 + $0x2f0] sm:$0xf]  ;;  %v2015_v46 = vor.u32 %v2691_v31, %v2014_v30  ;;  %v3230_v51 = vpack.c.bf16 %v54_v33, %v54_v33 }
  0x19   :  { %695 = vmatpush.bf16.msra.mxu2 %v2095_v5  ;;  %v2769_v39 = vld [vmem:[%s4164_s1 + $0x2f4] sm:$0xf0]  ;;  %v2704_v40 = vld [vmem:[%s4164_s1 + $0xf4] sm:$0xf]  ;;  %v2072_v43 = vld [vmem:[%s4164_s1 + $0xf8] sm:$0xf0]  ;;  %v2335_v47 = vor.u32 %v2771_v35, %v2334_v34 }
  0x1a   :  { %708 = vmatpush.bf16.msra.mxu3 %v2159_v6  ;;  %v2254_v44 = vld [vmem:[%s4164_s1 + $0x260] sm:$0xf]  ;;  %v2751_v48 = vld [vmem:[%s4164_s1 + $0x264] sm:$0xf0]  ;;  %v2686_v49 = vld [vmem:[%s4164_s1 + $0x64] sm:$0xf]  ;;  %v2327_v52 = vor.u32 %v2769_v39, %v2326_v38  ;;  %v2075_v55 = vor.u32 %v2704_v40, %v2072_v43 }
  0x1b   :  { %682 = vmatpush.bf16.msra.mxu1 %v2031_v10  ;;  %v52_v45 = vld [vmem:[%s4163_s0] sm:$0xff]  ;;  %v2000_v50 = vld [vmem:[%s4164_s1 + $0x68] sm:$0xf0]  ;;  %v55_v53 = vld [vmem:[%s4163_s0 + $0x18] sm:$0xff]  ;;  %v2255_v59 = vor.u32 %v2751_v48, %v2254_v44 }
  0x1c   :  { %670 = vmatpush.bf16.msra.mxu0 %v1959_v16  ;;  %v53_v54 = vld [vmem:[%s4163_s0 + $0x8] sm:$0xff]  ;;  %v2318_v56 = vld [vmem:[%s4164_s1 + $0x2e0] sm:$0xf]  ;;  %v3244_v58 = vpack.c.bf16 %v52_v45, %v52_v45  ;;  %v2003_v60 = vor.u32 %v2686_v49, %v2000_v50  ;;  %v2702_v61 = vld [vmem:[%s4164_s1 + $0xe4] sm:$0xf]  ;;  %v3264_v3 = vpack.c.bf16 %v55_v53, %v55_v53 }
  0x1d   :  { %696 = vmatpush.bf16.msra.mxu2 %v2087_v20  ;;  %v2767_v57 = vld [vmem:[%s4164_s1 + $0x2e4] sm:$0xf0]  ;;  %v2064_v62 = vld [vmem:[%s4164_s1 + $0xe8] sm:$0xf0]  ;;  %v2246_v63 = vld [vmem:[%s4164_s1 + $0x250] sm:$0xf]  ;;  %v3266_v4 = vpack.c.bf16 %v53_v54, %v53_v54 }
  0x1e   :  { %709 = vmatpush.bf16.msra.mxu3 %v2151_v21  ;;  %v2749_v0 = vld [vmem:[%s4164_s1 + $0x254] sm:$0xf0]  ;;  %v2684_v1 = vld [vmem:[%s4164_s1 + $0x54] sm:$0xf]  ;;  %v1992_v2 = vld [vmem:[%s4164_s1 + $0x58] sm:$0xf0]  ;;  %v2319_v5 = vor.u32 %v2767_v57, %v2318_v56  ;;  %v2067_v6 = vor.u32 %v2702_v61, %v2064_v62 }
  0x1f   :  { %683 = vmatpush.bf16.msra.mxu1 %v2023_v25  ;;  %v2310_v7 = vld [vmem:[%s4164_s1 + $0x2d0] sm:$0xf]  ;;  %v2765_v8 = vld [vmem:[%s4164_s1 + $0x2d4] sm:$0xf0]  ;;  %v2247_v9 = vor.u32 %v2749_v0, %v2246_v63  ;;  %v1995_v10 = vor.u32 %v2684_v1, %v1992_v2  ;;  %v2700_v11 = vld [vmem:[%s4164_s1 + $0xd4] sm:$0xf] }
  0x20   :  { %671 = vmatpush.bf16.msra.mxu0 %v1951_v32  ;;  %v2056_v12 = vld [vmem:[%s4164_s1 + $0xd8] sm:$0xf0]  ;;  %v2238_v13 = vld [vmem:[%s4164_s1 + $0x240] sm:$0xf]  ;;  %v2747_v14 = vld [vmem:[%s4164_s1 + $0x244] sm:$0xf0]  ;;  %v2311_v17 = vor.u32 %v2765_v8, %v2310_v7 }
  0x21   :  { %697 = vmatpush.bf16.msra.mxu2 %v2079_v36  ;;  %v2682_v15 = vld [vmem:[%s4164_s1 + $0x44] sm:$0xf]  ;;  %v1984_v16 = vld [vmem:[%s4164_s1 + $0x48] sm:$0xf0]  ;;  %v2059_v18 = vor.u32 %v2700_v11, %v2056_v12  ;;  %v2302_v19 = vld [vmem:[%s4164_s1 + $0x2c0] sm:$0xf]  ;;  %v2239_v21 = vor.u32 %v2747_v14, %v2238_v13 }
  0x22   :  { %710 = vmatpush.bf16.msra.mxu3 %v2143_v37  ;;  %v2763_v20 = vld [vmem:[%s4164_s1 + $0x2c4] sm:$0xf0]  ;;  %v1987_v22 = vor.u32 %v2682_v15, %v1984_v16  ;;  %v2698_v23 = vld [vmem:[%s4164_s1 + $0xc4] sm:$0xf]  ;;  %v2048_v24 = vld [vmem:[%s4164_s1 + $0xc8] sm:$0xf0] }
  0x23   :  { %684 = vmatpush.bf16.msra.mxu1 %v2015_v46  ;;  %672 = vmatmul.bf16.vlgmr.msra.gmra.mxu0 %v3244_v58  ;;  %v2230_v25 = vld [vmem:[%s4164_s1 + $0x230] sm:$0xf]  ;;  %v2745_v26 = vld [vmem:[%s4164_s1 + $0x234] sm:$0xf0]  ;;  %v2680_v27 = vld [vmem:[%s4164_s1 + $0x34] sm:$0xf]  ;;  %v2303_v29 = vor.u32 %v2763_v20, %v2302_v19  ;;  %v2051_v30 = vor.u32 %v2698_v23, %v2048_v24 }
  0x24   :  { %716 = vmatpush.bf16.msrb.mxu0 %v2263_v41  ;;  %698 = vmatmul.bf16.vlgmr.msra.gmra.mxu2 %v3230_v51  ;;  %v1976_v28 = vld [vmem:[%s4164_s1 + $0x38] sm:$0xf0]  ;;  %v2294_v31 = vld [vmem:[%s4164_s1 + $0x2b0] sm:$0xf]  ;;  %v2761_v32 = vld [vmem:[%s4164_s1 + $0x2b4] sm:$0xf0]  ;;  %v2231_v34 = vor.u32 %v2745_v26, %v2230_v25 }
  0x25   :  { %749 = vmatpush.bf16.msrb.mxu2 %v2335_v47  ;;  %711 = vmatmul.bf16.vlgmr.msra.gmra.mxu3 %v3264_v3  ;;  %v58_v33 = vld [vmem:[%s4163_s0 + $0x30] sm:$0xff]  ;;  %v1979_v35 = vor.u32 %v2680_v27, %v1976_v28  ;;  %v2040_v37 = vld [vmem:[%s4164_s1 + $0xb8] sm:$0xf0]  ;;  %v2222_v38 = vld [vmem:[%s4164_s1 + $0x220] sm:$0xf] }
  0x26   :  { %755 = vmatpush.bf16.msrb.mxu3 %v2011_v42  ;;  %685 = vmatmul.bf16.vlgmr.msra.gmra.mxu1 %v3266_v4  ;;  %v2696_v36 = vld [vmem:[%s4164_s1 + $0xb4] sm:$0xf]  ;;  %v2743_v39 = vld [vmem:[%s4164_s1 + $0x224] sm:$0xf0]  ;;  %v2678_v40 = vld [vmem:[%s4164_s1 + $0x24] sm:$0xf]  ;;  %v2295_v42 = vor.u32 %v2761_v32, %v2294_v31  ;;  %v3347_v43 = vpack.c.bf16 %v58_v33, %v58_v33 }
  0x27   :  { %729 = vmatpush.bf16.msrb.mxu1 %v2327_v52  ;;  %v1968_v41 = vld [vmem:[%s4164_s1 + $0x28] sm:$0xf0]  ;;  %v2043_v44 = vor.u32 %v2696_v36, %v2040_v37  ;;  %v2286_v45 = vld [vmem:[%s4164_s1 + $0x2a0] sm:$0xf]  ;;  %v2759_v46 = vld [vmem:[%s4164_s1 + $0x2a4] sm:$0xf0]  ;;  %v2223_v47 = vor.u32 %v2743_v39, %v2222_v38 }
  0x28   :  { %717 = vmatpush.bf16.msrb.mxu0 %v2255_v59  ;;  %v1971_v48 = vor.u32 %v2678_v40, %v1968_v41  ;;  %v2694_v49 = vld [vmem:[%s4164_s1 + $0xa4] sm:$0xf]  ;;  %v2032_v50 = vld [vmem:[%s4164_s1 + $0xa8] sm:$0xf0]  ;;  %v2214_v52 = vld [vmem:[%s4164_s1 + $0x210] sm:$0xf]  ;;  %v2287_v56 = vor.u32 %v2759_v46, %v2286_v45 }
  0x29   :  { %768 = vmatpush.bf16.msra.mxu2 %v2075_v55  ;;  %v2741_v53 = vld [vmem:[%s4164_s1 + $0x214] sm:$0xf0]  ;;  %v2676_v54 = vld [vmem:[%s4164_s1 + $0x14] sm:$0xf]  ;;  %v1960_v55 = vld [vmem:[%s4164_s1 + $0x18] sm:$0xf0]  ;;  %v2035_v57 = vor.u32 %v2694_v49, %v2032_v50 }
  0x2a   :  { %756 = vmatpush.bf16.msrb.mxu3 %v2003_v60  ;;  %v2278_v59 = vld [vmem:[%s4164_s1 + $0x290] sm:$0xf]  ;;  %v2757_v60 = vld [vmem:[%s4164_s1 + $0x294] sm:$0xf0]  ;;  %v2692_v61 = vld [vmem:[%s4164_s1 + $0x94] sm:$0xf]  ;;  %v2215_v62 = vor.u32 %v2741_v53, %v2214_v52  ;;  %v1963_v63 = vor.u32 %v2676_v54, %v1960_v55 }
  0x2b   :  { %730 = vmatpush.bf16.msrb.mxu1 %v2319_v5  ;;  %v2024_v0 = vld [vmem:[%s4164_s1 + $0x98] sm:$0xf0]  ;;  %v2206_v1 = vld [vmem:[%s4164_s1 + $0x200] sm:$0xf]  ;;  %v2739_v2 = vld [vmem:[%s4164_s1 + $0x204] sm:$0xf0]  ;;  %v2279_v8 = vor.u32 %v2757_v60, %v2278_v59 }
  0x2c   :  { %718 = vmatpush.bf16.msrb.mxu0 %v2247_v9  ;;  %v2674_v5 = vld [vmem:[%s4164_s1 + $0x4] sm:$0xf]  ;;  %v2720_v7 = vld [vmem:[%s4164_s1 + $0x174] sm:$0xf]  ;;  %v2136_v9 = vld [vmem:[%s4164_s1 + $0x178] sm:$0xf0]  ;;  %v2027_v12 = vor.u32 %v2692_v61, %v2024_v0  ;;  %v2207_v16 = vor.u32 %v2739_v2, %v2206_v1 }
  0x2d   :  { %769 = vmatpush.bf16.msra.mxu2 %v2067_v6  ;;  %v1952_v6 = vld [vmem:[%s4164_s1 + $0x8] sm:$0xf0]  ;;  %v2264_v11 = vld [vmem:[%s4164_s1 + $0x278] sm:$0xf0]  ;;  %v2270_v13 = vld [vmem:[%s4164_s1 + $0x280] sm:$0xf] }
  0x2e   :  { %757 = vmatpush.bf16.msrb.mxu3 %v1995_v10  ;;  %v2752_v10 = vld [vmem:[%s4164_s1 + $0x274] sm:$0xf]  ;;  %v2755_v14 = vld [vmem:[%s4164_s1 + $0x284] sm:$0xf0]  ;;  %v56_v15 = vld [vmem:[%s4163_s0 + $0x20] sm:$0xff] }
  0x2f   :  { %731 = vmatpush.bf16.msrb.mxu1 %v2311_v17  ;;  %v1955_v17 = vor.u32 %v2674_v5, %v1952_v6  ;;  %v2016_v19 = vld [vmem:[%s4164_s1 + $0x88] sm:$0xf0]  ;;  %v2736_v20 = vld [vmem:[%s4164_s1 + $0x1f4] sm:$0xf]  ;;  %v2200_v23 = vld [vmem:[%s4164_s1 + $0x1f8] sm:$0xf0]  ;;  %v2271_v26 = vor.u32 %v2755_v14, %v2270_v13 }
  0x30   :  { %719 = vmatpush.bf16.msrb.mxu0 %v2239_v21  ;;  %v2139_v21 = vor.u32 %v2720_v7, %v2136_v9  ;;  %v2768_v24 = vld [vmem:[%s4164_s1 + $0x2f4] sm:$0xf]  ;;  %v2328_v25 = vld [vmem:[%s4164_s1 + $0x2f8] sm:$0xf0]  ;;  %v57_v27 = vld [vmem:[%s4163_s0 + $0x28] sm:$0xff] }
  0x31   :  { %770 = vmatpush.bf16.msra.mxu2 %v2059_v18  ;;  %v2690_v18 = vld [vmem:[%s4164_s1 + $0x84] sm:$0xf]  ;;  %v2256_v33 = vld [vmem:[%s4164_s1 + $0x268] sm:$0xf0]  ;;  %v3458_v37 = vpack.c.bf16 %v57_v27, %v57_v27  ;;  %v2120_v45 = vld [vmem:[%s4164_s1 + $0x158] sm:$0xf0] }
  0x32   :  { %758 = vmatpush.bf16.msrb.mxu3 %v1987_v22  ;;  %v2267_v22 = vor.u32 %v2752_v10, %v2264_v11  ;;  %v2718_v28 = vld [vmem:[%s4164_s1 + $0x164] sm:$0xf]  ;;  %v2019_v31 = vor.u32 %v2690_v18, %v2016_v19  ;;  %v2192_v39 = vld [vmem:[%s4164_s1 + $0x1e8] sm:$0xf0]  ;;  %v2748_v46 = vld [vmem:[%s4164_s1 + $0x254] sm:$0xf] }
  0x33   :  { %732 = vmatpush.bf16.msrb.mxu1 %v2303_v29  ;;  %v2128_v29 = vld [vmem:[%s4164_s1 + $0x168] sm:$0xf0]  ;;  %v2750_v32 = vld [vmem:[%s4164_s1 + $0x264] sm:$0xf]  ;;  %v2732_v50 = vld [vmem:[%s4164_s1 + $0x1d4] sm:$0xf] }
  0x34   :  { %720 = vmatpush.bf16.msrb.mxu0 %v2231_v34  ;;  %2340 = vmatmul.msk.bf16.vlgmr.msrb.gmra.mxu2 %vm660_vm0, %v3347_v43  ;;  %v2203_v34 = vor.u32 %v2736_v20, %v2200_v23  ;;  %v2734_v36 = vld [vmem:[%s4164_s1 + $0x1e4] sm:$0xf]  ;;  %v2131_v38 = vor.u32 %v2718_v28, %v2128_v29  ;;  %v2320_v41 = vld [vmem:[%s4164_s1 + $0x2e8] sm:$0xf0]  ;;  %v2184_v52 = vld [vmem:[%s4164_s1 + $0x1d8] sm:$0xf0] }
  0x35   :  { %771 = vmatpush.bf16.msra.mxu2 %v2051_v30  ;;  %v3447_v30 = vpack.c.bf16 %v56_v15, %v56_v15  ;;  %v2766_v40 = vld [vmem:[%s4164_s1 + $0x2e4] sm:$0xf]  ;;  %v2764_v53 = vld [vmem:[%s4164_s1 + $0x2d4] sm:$0xf]  ;;  %v2312_v55 = vld [vmem:[%s4164_s1 + $0x2d8] sm:$0xf0] }
  0x36   :  { %759 = vmatpush.bf16.msrb.mxu3 %v1979_v35  ;;  %v2331_v35 = vor.u32 %v2768_v24, %v2328_v25  ;;  %v2323_v49 = vor.u32 %v2766_v40, %v2320_v41  ;;  %v2746_v60 = vld [vmem:[%s4164_s1 + $0x244] sm:$0xf]  ;;  %v2240_v61 = vld [vmem:[%s4164_s1 + $0x248] sm:$0xf0] }
  0x37   :  { %733 = vmatpush.bf16.msrb.mxu1 %v2295_v42  ;;  %v2259_v42 = vor.u32 %v2750_v32, %v2256_v33  ;;  %v2730_v0 = vld [vmem:[%s4164_s1 + $0x1c4] sm:$0xf] }
  0x38   :  { %721 = vmatpush.bf16.msrb.mxu0 %v2223_v47  ;;  %v2248_v47 = vld [vmem:[%s4164_s1 + $0x258] sm:$0xf0] }
  0x39   :  { %772 = vmatpush.bf16.msra.mxu2 %v2043_v44  ;;  %v2716_v44 = vld [vmem:[%s4164_s1 + $0x154] sm:$0xf]  ;;  %v2251_v59 = vor.u32 %v2748_v46, %v2248_v47 }
  0x3a   :  { %760 = vmatpush.bf16.msrb.mxu3 %v1971_v48  ;;  %v2195_v48 = vor.u32 %v2734_v36, %v2192_v39  ;;  %v2123_v54 = vor.u32 %v2716_v44, %v2120_v45 }
  0x3b   :  { %734 = vmatpush.bf16.msrb.mxu1 %v2287_v56  ;;  %v2714_v56 = vld [vmem:[%s4164_s1 + $0x144] sm:$0xf] }
  0x3c   :  { %722 = vmatpush.bf16.msrb.mxu0 %v2215_v62  ;;  %v2187_v62 = vor.u32 %v2732_v50, %v2184_v52 }
  0x3d   :  { %773 = vmatpush.bf16.msra.mxu2 %v2035_v57  ;;  %v2112_v57 = vld [vmem:[%s4164_s1 + $0x148] sm:$0xf0] }
  0x3e   :  { %761 = vmatpush.bf16.msrb.mxu3 %v1963_v63  ;;  %v2315_v63 = vor.u32 %v2764_v53, %v2312_v55 }
  0x3f   :  { %735 = vmatpush.bf16.msrb.mxu1 %v2279_v8 }
  0x40   :  { %723 = vmatpush.bf16.msrb.mxu0 %v2207_v16 }
  0x41   :  { %774 = vmatpush.bf16.msra.mxu2 %v2027_v12 }
  0x42   :  { %762 = vmatpush.bf16.msrb.mxu3 %v1955_v17 }
  0x43   :  { %736 = vmatpush.bf16.msrb.mxu1 %v2271_v26  ;;  %724 = vmatmul.bf16.vlgmr.msrb.gmra.mxu0 %v3447_v30 }
  0x44   :  { %781 = vmatpush.bf16.msra.mxu0 %v2139_v21 }
  0x45   :  { %775 = vmatpush.bf16.msra.mxu2 %v2019_v31  ;;  %763 = vmatmul.bf16.vlgmr.msrb.gmra.mxu3 %v3244_v58 }
  0x46   :  { %807 = vmatpush.bf16.msra.mxu3 %v2267_v22  ;;  %737 = vmatmul.bf16.vlgmr.msrb.gmra.mxu1 %v3458_v37 }
  0x47   :  { %794 = vmatpush.bf16.msra.mxu1 %v2203_v34 }
  0x48   :  { %782 = vmatpush.bf16.msra.mxu0 %v2131_v38  ;;  %776 = vmatmul.bf16.vlgmr.msra.gmra.mxu2 %v3266_v4 }
  0x49   :  { %820 = vmatpush.bf16.msrb.mxu2 %v2331_v35 }
  0x4a   :  { %808 = vmatpush.bf16.msra.mxu3 %v2259_v42 }
  0x4b   :  { %795 = vmatpush.bf16.msra.mxu1 %v2195_v48 }
  0x4d   :  { %821 = vmatpush.bf16.msrb.mxu2 %v2323_v49 }
  0x4e   :  { %20 = vsyncpa [#allocation3], 0  ;;  %783 = vmatpush.bf16.msra.mxu0 %v2123_v54  ;;  %v2115_v1 = vor.u32 %v2714_v56, %v2112_v57  ;;  %v2176_v2 = vld [vmem:[%s4164_s1 + $0x1c8] sm:$0xf0]  ;;  %v2762_v4 = vld [vmem:[%s4164_s1 + $0x2c4] sm:$0xf]  ;;  %809 = vmatpush.bf16.msra.mxu3 %v2251_v59  ;;  %v2243_v5 = vor.u32 %v2746_v60, %v2240_v61 }
  0x4f   :  { %v2304_v58 = vld [vmem:[%s4164_s1 + $0x2c8] sm:$0xf0]  ;;  %v2712_v6 = vld [vmem:[%s4164_s1 + $0x134] sm:$0xf]  ;;  %v2104_v7 = vld [vmem:[%s4164_s1 + $0x138] sm:$0xf0]  ;;  %796 = vmatpush.bf16.msra.mxu1 %v2187_v62  ;;  %v2179_v10 = vor.u32 %v2730_v0, %v2176_v2 }
  0x50   :  { %v2744_v8 = vld [vmem:[%s4164_s1 + $0x234] sm:$0xf]  ;;  %v2232_v9 = vld [vmem:[%s4164_s1 + $0x238] sm:$0xf0]  ;;  %v2307_v11 = vor.u32 %v2762_v4, %v2304_v58  ;;  %v2107_v13 = vor.u32 %v2712_v6, %v2104_v7  ;;  %v2710_v18 = vld [vmem:[%s4164_s1 + $0x124] sm:$0xf] }
  0x51   :  { %822 = vmatpush.bf16.msrb.mxu2 %v2315_v63  ;;  %v2728_v12 = vld [vmem:[%s4164_s1 + $0x1b4] sm:$0xf]  ;;  %v2168_v14 = vld [vmem:[%s4164_s1 + $0x1b8] sm:$0xf0]  ;;  %v2235_v17 = vor.u32 %v2744_v8, %v2232_v9  ;;  %v2096_v19 = vld [vmem:[%s4164_s1 + $0x128] sm:$0xf0] }
  0x52   :  { %784 = vmatpush.bf16.msra.mxu0 %v2115_v1  ;;  %v2760_v15 = vld [vmem:[%s4164_s1 + $0x2b4] sm:$0xf]  ;;  %v2296_v16 = vld [vmem:[%s4164_s1 + $0x2b8] sm:$0xf0]  ;;  %810 = vmatpush.bf16.msra.mxu3 %v2243_v5  ;;  %v2742_v20 = vld [vmem:[%s4164_s1 + $0x224] sm:$0xf]  ;;  %v2171_v22 = vor.u32 %v2728_v12, %v2168_v14  ;;  %v2099_v25 = vor.u32 %v2710_v18, %v2096_v19 }
  0x53   :  { %v2224_v21 = vld [vmem:[%s4164_s1 + $0x228] sm:$0xf0]  ;;  %797 = vmatpush.bf16.msra.mxu1 %v2179_v10  ;;  %v2299_v23 = vor.u32 %v2760_v15, %v2296_v16  ;;  %v2726_v24 = vld [vmem:[%s4164_s1 + $0x1a4] sm:$0xf]  ;;  %v2708_v31 = vld [vmem:[%s4164_s1 + $0x114] sm:$0xf] }
  0x54   :  { %v2160_v26 = vld [vmem:[%s4164_s1 + $0x1a8] sm:$0xf0]  ;;  %v2758_v27 = vld [vmem:[%s4164_s1 + $0x2a4] sm:$0xf]  ;;  %v2227_v29 = vor.u32 %v2742_v20, %v2224_v21  ;;  %v2088_v32 = vld [vmem:[%s4164_s1 + $0x118] sm:$0xf0] }
  0x55   :  { %823 = vmatpush.bf16.msrb.mxu2 %v2307_v11  ;;  %v2288_v28 = vld [vmem:[%s4164_s1 + $0x2a8] sm:$0xf0]  ;;  %v2740_v33 = vld [vmem:[%s4164_s1 + $0x214] sm:$0xf]  ;;  %v2216_v34 = vld [vmem:[%s4164_s1 + $0x218] sm:$0xf0]  ;;  %v2163_v35 = vor.u32 %v2726_v24, %v2160_v26  ;;  %v2091_v39 = vor.u32 %v2708_v31, %v2088_v32 }
  0x56   :  { %785 = vmatpush.bf16.msra.mxu0 %v2107_v13  ;;  %811 = vmatpush.bf16.msra.mxu3 %v2235_v17  ;;  %v2291_v36 = vor.u32 %v2758_v27, %v2288_v28  ;;  %v2724_v38 = vld [vmem:[%s4164_s1 + $0x194] sm:$0xf]  ;;  %v2152_v40 = vld [vmem:[%s4164_s1 + $0x198] sm:$0xf0]  ;;  %v2219_v44 = vor.u32 %v2740_v33, %v2216_v34  ;;  %v2706_v45 = vld [vmem:[%s4164_s1 + $0x104] sm:$0xf] }
  0x57   :  { %798 = vmatpush.bf16.msra.mxu1 %v2171_v22  ;;  %v2756_v41 = vld [vmem:[%s4164_s1 + $0x294] sm:$0xf]  ;;  %v2280_v42 = vld [vmem:[%s4164_s1 + $0x298] sm:$0xf0]  ;;  %v2080_v46 = vld [vmem:[%s4164_s1 + $0x108] sm:$0xf0]  ;;  %v2155_v52 = vor.u32 %v2724_v38, %v2152_v40 }
  0x58   :  { %v2738_v47 = vld [vmem:[%s4164_s1 + $0x204] sm:$0xf]  ;;  %v2208_v48 = vld [vmem:[%s4164_s1 + $0x208] sm:$0xf0]  ;;  %v2283_v53 = vor.u32 %v2756_v41, %v2280_v42  ;;  %v2083_v54 = vor.u32 %v2706_v45, %v2080_v46  ;;  %v2779_v0 = vld [vmem:[%s4166_s3 + $0x38] sm:$0xff]  ;;  %vm926_vm1 = vcmask 1040384  }
  0x59   :  { %824 = vmatpush.bf16.msrb.mxu2 %v2299_v23  ;;  %v2770_v49 = vld [vmem:[%s4164_s1 + $0x304] sm:$0xf]  ;;  %v2336_v50 = vld [vmem:[%s4164_s1 + $0x308] sm:$0xf0]  ;;  %v2211_v57 = vor.u32 %v2738_v47, %v2208_v48  ;;  %v2778_v1 = vld [vmem:[%s4166_s3 + $0x30] sm:$0xff]  ;;  %vm922_vm2 = vcmask 15360  }
  0x5a   :  { %786 = vmatpush.bf16.msra.mxu0 %v2099_v25  ;;  %812 = vmatpush.bf16.msra.mxu3 %v2227_v29  ;;  %v2722_v55 = vld [vmem:[%s4164_s1 + $0x184] sm:$0xf]  ;;  %v2144_v56 = vld [vmem:[%s4164_s1 + $0x188] sm:$0xf0]  ;;  %v2339_v61 = vor.u32 %v2770_v49, %v2336_v50  ;;  %v157_v6 = vld [vmem:[%s4165_s2] sm:$0x3] }
  0x5b   :  { %799 = vmatpush.bf16.msra.mxu1 %v2163_v35  ;;  %v2754_v59 = vld [vmem:[%s4164_s1 + $0x284] sm:$0xf]  ;;  %v2272_v60 = vld [vmem:[%s4164_s1 + $0x288] sm:$0xf0]  ;;  %v2147_v62 = vor.u32 %v2722_v55, %v2144_v56  ;;  %v166_v10 = vperm.slane %v157_v6, 0  ;;  %v167_v38 = vperm.slane %v157_v6, 1 }
  0x5c   :  { %v2275_v63 = vor.u32 %v2754_v59, %v2272_v60  ;;  %v2772_v58 = vld [vmem:[%s4166_s3] sm:$0xff]  ;;  %vm1002_vm3 = vcmask 1042432   ;;  %vm1041_vm4 = vcmask 1041408   ;;  %vm998_vm5 = vcmask 572416   ;;  %s1939_s0 = sshll.u32 %s4178_s15, 4  ;;  %s1940_s0 = int_to_ptr.hbm [resolvable:$true] %s1939_s0 }
  0x5d   :  { %825 = vmatpush.bf16.msrb.mxu2 %v2291_v36  ;;  %v864_v24 = vld [vmem:[%s4166_s3 + $0x40] sm:$0x1]  ;;  %vm1037_vm6 = vcmask 162816  }
  0x5e   :  { %787 = vmatpush.bf16.msra.mxu0 %v2091_v39  ;;  %813 = vmatpush.bf16.msra.mxu3 %v2219_v44  ;;  %v904_v25 = vunpack.c.l.b16 %v864_v24  ;;  %v2784_v6 = vld [vmem:[%s4170_s7] sm:$0xff] }
  0x5f   :  { %800 = vmatpush.bf16.msra.mxu1 %v2155_v52 }
  0x60   :  { %v913_v28 = vpack.c.b16 %v904_v25, %v904_v25  ;;  %v1104_v25 = vld [vmem:[%s4174_s11 + $0x40] sm:$0x77] }
  0x61   :  { %826 = vmatpush.bf16.msrb.mxu2 %v2283_v53 }
  0x62   :  { %788 = vmatpush.bf16.msra.mxu0 %v2083_v54  ;;  %814 = vmatpush.bf16.msra.mxu3 %v2211_v57  ;;  %v928_v34 = vsel %vm926_vm1, %v913_v28, 0  ;;  %v2428_v28 = vld [vmem:[%s4174_s11 + $0x30] sm:$0xf] }
  0x63   :  { %801 = vmatpush.bf16.msra.mxu1 %v2147_v62 }
  0x65   :  { %789 = vmatmul.bf16.vlgmr.msra.gmra.mxu0 %v3230_v51  ;;  %815 = vmatmul.bf16.vlgmr.msra.gmra.mxu3 %v3447_v30  ;;  %v2777_v51 = vld [vmem:[%s4166_s3 + $0x28] sm:$0xff]  ;;  %v2774_v30 = vld [vmem:[%s4166_s3 + $0x10] sm:$0xff] }
  0x66   :  { %840 = vmatpush.bf16.msrb.mxu0 %v2339_v61  ;;  %827 = vmatpush.bf16.msrb.mxu2 %v2275_v63  ;;  %v965_v61 = vld [vmem:[%s4168_s5 + $0x20] sm:$0x7] }
  0x67   :  { %802 = vmatmul.bf16.vlgmr.msra.gmra.mxu1 %v3264_v3  ;;  %v2776_v3 = vld [vmem:[%s4166_s3 + $0x20] sm:$0xff]  ;;  %950 = vmatpush.bf16.msrb.mxu3 %v928_v34  ;;  %v988_v62 = vunpack.c.l.b16 %v965_v61  ;;  %v2430_v34 = vld [vmem:[%s4174_s11 + $0x38] sm:$0xf0] }
  0x68   :  { %930 = vmatpush.bf16.msrb.mxu1 %v2779_v0  ;;  %v2404_v61 = vld [vmem:[%s4174_s11] sm:$0xf] }
  0x69   :  { %828 = vmatmul.bf16.vlgmr.msrb.gmra.mxu2 %v3458_v37  ;;  %v2773_v37 = vld [vmem:[%s4166_s3 + $0x8] sm:$0xff]  ;;  %v993_v63 = vpack.c.b16 %v988_v62, %v988_v62 }
  0x6a   :  { %v2787_v62 = vld [vmem:[%s4174_s11 + $0x4] sm:$0xf0] }
  0x6b   :  { %v1004_v0 = vsel %vm1002_vm3, %v993_v63, 0  ;;  %v2786_v63 = vld [vmem:[%s4174_s11 + $0x4] sm:$0xf] }
  0x6c   :  { %931 = vmatpush.bf16.msrb.mxu1 %v2778_v1  ;;  %1009 = vmatpush.bf16.msra.mxu0 %v1004_v0  ;;  %v2783_v1 = vld [vmem:[%s4168_s5 + $0x18] sm:$0xff]  ;;  %v2405_v0 = vor.u32 %v2787_v62, %v2404_v61  ;;  %v2844_v61 = vld [vmem:[%s4176_s13 + $0x194] sm:$0xf]  ;;  %v2644_v62 = vld [vmem:[%s4176_s13 + $0x1ac] sm:$0xf0] }
  0x70   :  { %932 = vmatpush.bf16.msrb.mxu1 %v2777_v51  ;;  %1010 = vmatpush.bf16.msra.mxu0 %v2783_v1  ;;  %v2782_v51 = vld [vmem:[%s4168_s5 + $0x10] sm:$0xff]  ;;  %v2406_v1 = vld [vmem:[%s4174_s11 + $0x8] sm:$0xf0] }
  0x74   :  { %933 = vmatpush.bf16.msrb.mxu1 %v2776_v3  ;;  %1011 = vmatpush.bf16.msra.mxu0 %v2782_v51  ;;  %v2409_v51 = vor.u32 %v2786_v63, %v2406_v1 }
  0x75   :  { %2341 = vmatmul.msk.bf16.vlgmr.msrb.gmra.mxu0 %vm660_vm0, %v3347_v43  ;;  %v2775_v43 = vld [vmem:[%s4166_s3 + $0x18] sm:$0xff] }
  0x78   :  { %934 = vmatpush.bf16.msrb.mxu1 %v2775_v43 }
  0x7c   :  { %935 = vmatpush.bf16.msrb.mxu1 %v2774_v30  ;;  %v2781_v30 = vld [vmem:[%s4168_s5 + $0x8] sm:$0xff] }
  0x7d   :  { %1012 = vmatpush.bf16.msra.mxu0 %v2781_v30  ;;  %v2642_v30 = vld [vmem:[%s4176_s13 + $0x190] sm:$0xf] }
  0x80   :  { %936 = vmatpush.bf16.msrb.mxu1 %v2773_v37  ;;  %v2780_v37 = vld [vmem:[%s4168_s5] sm:$0xff] }
  0x81   :  { %1013 = vmatpush.bf16.msra.mxu0 %v2780_v37 }
  0x84   :  { %937 = vmatpush.bf16.msrb.mxu1 %v2772_v58 }
  0xa0   :  { %v673_v2 = vpop.f32.mrf.mxu0 }
  0xa1   :  { %v674_v12 = vadd.f32 %v673_v2, %v166_v10  ;;  %v1022_v2 = vld [vmem:[%s4170_s7 + $0x8] sm:$0x3] }
  0xa3   :  { %v686_v4 = vpop.f32.mrf.mxu1 }
  0xa4   :  { %v687_v14 = vadd.f32 %v686_v4, %v674_v12  ;;  %v1033_v4 = vunpack.c.l.b16 %v1022_v2  ;;  %v2847_v2 = vld [vmem:[%s4176_s13 + $0x1a8] sm:$0xf0] }
  0xa6   :  { %v1035_v58 = vpack.c.b16 %v1033_v4, %v1033_v4  ;;  %v2606_v4 = vld [vmem:[%s4176_s13 + $0x150] sm:$0xf] }
  0xa7   :  { %v699_v5 = vpop.f32.mrf.mxu2 }
  0xa8   :  { %v712_v7 = vpop.f32.mrf.mxu3  ;;  %v675_v8 = vpop.f32.mrf.mxu0  ;;  %v700_v16 = vadd.f32 %v699_v5, %v687_v14  ;;  %v1043_v5 = vsel %vm1041_vm4, %v1035_v58, 0  ;;  %v1061_v14 = vld [vmem:[%s4172_s9 + $0x8] sm:$0x3]  ;;  %v2839_v58 = vld [vmem:[%s4176_s13 + $0x168] sm:$0xf0] }
  0xa9   :  { %1051 = vmatpush.bf16.msra.mxu2 %v1043_v5  ;;  %v2643_v5 = vor.u32 %v2847_v2, %v2642_v30  ;;  %v2474_v30 = vld [vmem:[%s4176_s13 + $0x40] sm:$0xf]  ;;  %v2805_v2 = vld [vmem:[%s4176_s13 + $0x58] sm:$0xf0] }
  0xaa   :  { %v713_v17 = vadd.f32 %v712_v7, %v700_v16  ;;  %v2851_v7 = vld [vmem:[%s4167_s4] ss:$0 sm:$0xff] }
  0xab   :  { %v688_v9 = vpop.f32.mrf.mxu1 }
  0xad   :  { %1052 = vmatpush.bf16.msra.mxu2 %v2784_v6  ;;  %v2614_v6 = vld [vmem:[%s4176_s13 + $0x158] sm:$0xf] }
  0xaf   :  { %v701_v11 = vpop.f32.mrf.mxu2 }
  0xb0   :  { %v714_v13 = vpop.f32.mrf.mxu3 }
  0xb7   :  { %v751_v15 = vpop.f32.mrf.mxu2 }
  0xbf   :  { %v753_v20 = vpop.f32.mrf.mxu2 }
  0xc0   :  { %v725_v18 = vpop.f32.mrf.mxu0 }
  0xc1   :  { %v726_v19 = vadd.f32 %v725_v18, %v713_v17  ;;  %v2785_v18 = vld [vmem:[%s4172_s9] sm:$0xff] }
  0xc3   :  { %v738_v21 = vpop.f32.mrf.mxu1 }
  0xc4   :  { %v739_v22 = vadd.f32 %v738_v21, %v726_v19  ;;  %v2852_v19 = vld [vmem:[%s4169_s6] ss:$0 sm:$0xff] }
  0xc6   :  { %v752_v23 = vadd.f32 %v751_v15, %v739_v22  ;;  %v1072_v15 = vunpack.c.l.b16 %v1061_v14  ;;  %v2843_v14 = vld [vmem:[%s4176_s13 + $0x18c] sm:$0xf] }
  0xc8   :  { %v846_v26 = vmax.f32 %v752_v23, 0.0  ;;  %v727_v27 = vpop.f32.mrf.mxu0  ;;  %v764_v32 = vpop.f32.mrf.mxu3  ;;  %v1074_v16 = vpack.c.b16 %v1072_v15, %v1072_v15  ;;  %v2636_v15 = vld [vmem:[%s4176_s13 + $0x1a4] sm:$0xf0] }
  0xc9   :  { %v765_v39 = vadd.f32 %v764_v32, %v167_v38  ;;  %v1138_v27 = vunpack.c.h.b16 %v1104_v25  ;;  %v2793_v32 = vld [vmem:[%s4174_s11 + $0x34] sm:$0xf0] }
  0xca   :  { %v866_v29 = vpack.c.bf16 %v846_v26, %v846_v26  ;;  %v1080_v17 = vsel %vm1041_vm4, %v1074_v16, 0  ;;  %v1137_v26 = vunpack.c.l.b16 %v1104_v25  ;;  %v2429_v38 = vor.u32 %v2793_v32, %v2428_v28  ;;  %v2825_v28 = vld [vmem:[%s4176_s13 + $0xf8] sm:$0xf0]  ;;  %v2826_v32 = vld [vmem:[%s4176_s13 + $0x100] sm:$0xf0] }
  0xcb   :  { %v777_v31 = vpop.f32.mrf.mxu2  ;;  %v740_v33 = vpop.f32.mrf.mxu1  ;;  %1088 = vmatpush.bf16.msra.mxu3 %v1080_v17  ;;  %v2586_v17 = vld [vmem:[%s4176_s13 + $0x120] sm:$0xf] }
  0xcc   :  { %938 = vmatmul.bf16.vlgmr.msrb.gmra.mxu1 %v866_v29  ;;  %v778_v41 = vadd.f32 %v777_v31, %v765_v39  ;;  %v1147_v29 = vpack.c.b16 %v1137_v26, %v1137_v26  ;;  %v1148_v31 = vpack.c.b16 %v1138_v27, %v1138_v27  ;;  %v2792_v33 = vld [vmem:[%s4174_s11 + $0x34] sm:$0xf]  ;;  %v2550_v27 = vld [vmem:[%s4176_s13 + $0xe0] sm:$0xf] }
  0xcd   :  { %v2433_v39 = vor.u32 %v2792_v33, %v2430_v34  ;;  %v2551_v34 = vor.u32 %v2825_v28, %v2550_v27  ;;  %v2823_v28 = vld [vmem:[%s4176_s13 + $0xec] sm:$0xf] }
  0xcf   :  { %1089 = vmatpush.bf16.msra.mxu3 %v2785_v18  ;;  %v2833_v18 = vld [vmem:[%s4176_s13 + $0x138] sm:$0xf0] }
  0xd0   :  { %v766_v36 = vpop.f32.mrf.mxu3  ;;  %v2587_v26 = vor.u32 %v2833_v18, %v2586_v17 }
  0xd1   :  { %v1164_v36 = vsel %vm1002_vm3, %v1148_v31, 0  ;;  %v2558_v31 = vld [vmem:[%s4176_s13 + $0xe8] sm:$0xf] }
  0xd2   :  { %1182 = vmatpush.bf16.msrb.mxu2 %v1164_v36  ;;  %v2580_v36 = vld [vmem:[%s4176_s13 + $0x134] sm:$0xf0] }
  0xd3   :  { %v779_v35 = vpop.f32.mrf.mxu2 }
  0xd4   :  { %v1161_v35 = vsel %vm1002_vm3, %v1147_v29, 0 }
  0xd5   :  { %1169 = vmatpush.bf16.msra.mxu1 %v1161_v35  ;;  %v2829_v35 = vld [vmem:[%s4176_s13 + $0x11c] sm:$0xf] }
  0xd6   :  { %1183 = vmatpush.bf16.msrb.mxu2 %v2433_v39  ;;  %v2522_v39 = vld [vmem:[%s4176_s13 + $0xa8] sm:$0xf] }
  0xd9   :  { %1170 = vmatpush.bf16.msra.mxu1 %v2429_v38  ;;  %v2559_v38 = vor.u32 %v2826_v32, %v2558_v31 }
  0xe2   :  { %v790_v40 = vpop.f32.mrf.mxu0 }
  0xe3   :  { %v791_v44 = vadd.f32 %v790_v40, %v778_v41  ;;  %v2420_v40 = vld [vmem:[%s4174_s11 + $0x20] sm:$0xf]  ;;  %v2791_v41 = vld [vmem:[%s4174_s11 + $0x24] sm:$0xf0] }
  0xe4   :  { %v803_v42 = vpop.f32.mrf.mxu1 }
  0xe5   :  { %v804_v47 = vadd.f32 %v803_v42, %v791_v44  ;;  %v2790_v42 = vld [vmem:[%s4174_s11 + $0x24] sm:$0xf]  ;;  %v2422_v44 = vld [vmem:[%s4174_s11 + $0x28] sm:$0xf0] }
  0xe8   :  { %v816_v45 = vpop.f32.mrf.mxu3 }
  0xe9   :  { %v817_v49 = vadd.f32 %v816_v45, %v804_v47  ;;  %v2421_v45 = vor.u32 %v2791_v41, %v2420_v40  ;;  %v2853_v47 = vld [vmem:[%s4171_s8] ss:$0 sm:$0xff]  ;;  %v2818_v40 = vld [vmem:[%s4176_s13 + $0xc0] sm:$0xf0]  ;;  %v2530_v41 = vld [vmem:[%s4176_s13 + $0xb0] sm:$0xf] }
  0xea   :  { %v792_v46 = vpop.f32.mrf.mxu0 }
  0xeb   :  { %v2425_v46 = vor.u32 %v2790_v42, %v2422_v44  ;;  %1171 = vmatpush.bf16.msra.mxu1 %v2421_v45  ;;  %v2819_v42 = vld [vmem:[%s4176_s13 + $0xc8] sm:$0xf0]  ;;  %v2583_v44 = vor.u32 %v2829_v35, %v2580_v36  ;;  %v2523_v45 = vor.u32 %v2818_v40, %v2522_v39  ;;  %v2440_v35 = vld [vmem:[%s4176_s13 + $0x1c] sm:$0xf0]  ;;  %v2816_v39 = vld [vmem:[%s4176_s13 + $0xb4] sm:$0xf] }
  0xec   :  { %v829_v48 = vpop.f32.mrf.mxu2  ;;  %v805_v50 = vpop.f32.mrf.mxu1  ;;  %v2532_v40 = vld [vmem:[%s4176_s13 + $0xcc] sm:$0xf0] }
  0xed   :  { %v830_v52 = vadd.f32 %v829_v48, %v817_v49  ;;  %1184 = vmatpush.bf16.msrb.mxu2 %v2425_v46  ;;  %v2822_v46 = vld [vmem:[%s4176_s13 + $0xe4] sm:$0xf] }
  0xf0   :  { %v818_v53 = vpop.f32.mrf.mxu3 }
  0xf2   :  { %v842_v54 = vpop.f32.mrf.mxu0 }
  0xf3   :  { %v843_v55 = vadd.f32 %v842_v54, %v830_v52  ;;  %v2412_v54 = vld [vmem:[%s4174_s11 + $0x10] sm:$0xf] }
  0xf4   :  { %v831_v56 = vpop.f32.mrf.mxu2 }
  0xf5   :  { %v847_v57 = vmax.f32 %v843_v55, 0.0  ;;  %v2789_v55 = vld [vmem:[%s4174_s11 + $0x14] sm:$0xf0]  ;;  %v2788_v56 = vld [vmem:[%s4174_s11 + $0x14] sm:$0xf] }
  0xf7   :  { %v867_v59 = vpack.c.bf16 %v847_v57, %v847_v57  ;;  %v2413_v57 = vor.u32 %v2789_v55, %v2412_v54 }
  0xf9   :  { %2374 = vmatmul.msk.bf16.vlgmr.msrb.gmra.mxu3 %vm922_vm2, %v867_v59  ;;  %v2414_v59 = vld [vmem:[%s4174_s11 + $0x18] sm:$0xf0]  ;;  %1172 = vmatpush.bf16.msra.mxu1 %v2413_v57  ;;  %v2854_v57 = vld [vmem:[%s4173_s10] ss:$0 sm:$0xff] }
  0xfa   :  { %v844_v60 = vpop.f32.mrf.mxu0 }
  0xfb   :  { %v2417_v60 = vor.u32 %v2788_v56, %v2414_v59 }
  0xfd   :  { %1185 = vmatpush.bf16.msrb.mxu2 %v2417_v60  ;;  %1173 = vmatpush.bf16.msra.mxu1 %v2405_v0  ;;  %v2647_v0 = vor.u32 %v2844_v61, %v2644_v62  ;;  %v2658_v61 = vld [vmem:[%s4176_s13 + $0x1a0] sm:$0xf]  ;;  %v2849_v62 = vld [vmem:[%s4176_s13 + $0x1b8] sm:$0xf0] }
 0x101   :  { %1186 = vmatpush.bf16.msrb.mxu2 %v2409_v51 }
 0x149   :  { %v939_v3 = vpop.f32.mrf.mxu1 }
 0x14a   :  { %v940_v8 = vadd.f32 %v2851_v7, %v939_v3  ;;  %v2634_v3 = vld [vmem:[%s4176_s13 + $0x188] sm:$0xf]  ;;  %v2840_v7 = vld [vmem:[%s4176_s13 + $0x170] sm:$0xf0] }
 0x151   :  { %v941_v43 = vpop.f32.mrf.mxu1 }
 0x152   :  { %v2846_v43 = vld [vmem:[%s4176_s13 + $0x1a0] sm:$0xf0] }
 0x153   :  { %v2635_v37 = vor.u32 %v2846_v43, %v2634_v3  ;;  %v2466_v3 = vld [vmem:[%s4176_s13 + $0x38] sm:$0xf]  ;;  %v2804_v43 = vld [vmem:[%s4176_s13 + $0x50] sm:$0xf0] }
 0x155   :  { %1610 = vmatpush.bf16.msrb.mxu3 %v2635_v37  ;;  %v2467_v37 = vor.u32 %v2804_v43, %v2466_v3  ;;  %v2630_v43 = vld [vmem:[%s4176_s13 + $0x168] sm:$0xf] }
 0x17c   :  { %v952_v9 = vpop.f32.mrf.mxu3 }
 0x17d   :  { %v953_v10 = vadd.f32 %v952_v9, %v940_v8  ;;  %v2607_v8 = vor.u32 %v2839_v58, %v2606_v4  ;;  %v2578_v9 = vld [vmem:[%s4176_s13 + $0x118] sm:$0xf]  ;;  %v2815_v4 = vld [vmem:[%s4176_s13 + $0xac] sm:$0xf]  ;;  %v2524_v58 = vld [vmem:[%s4176_s13 + $0xc4] sm:$0xf0] }
 0x17f   :  { %v956_v11 = vmax.f32 %v953_v10, 0.0  ;;  %v1258_v10 = vld [vmem:[%s4176_s13 + $0x1c0] sm:$0x11]  ;;  %1611 = vmatpush.bf16.msrb.mxu3 %v2607_v8  ;;  %v2616_v8 = vld [vmem:[%s4176_s13 + $0x174] sm:$0xf0] }
 0x180   :  { %v1461_v16 = vunpack.c.h.b16 %v1258_v10 }
 0x181   :  { %v967_v12 = vpack.c.bf16 %v956_v11, %v956_v11  ;;  %v2615_v11 = vor.u32 %v2840_v7, %v2614_v6  ;;  %v2527_v6 = vor.u32 %v2815_v4, %v2524_v58  ;;  %v2837_v7 = vld [vmem:[%s4176_s13 + $0x15c] sm:$0xf] }
 0x183   :  { %2391 = vmatmul.msk.bf16.vlgmr.msra.gmra.mxu0 %vm998_vm5, %v967_v12  ;;  %v2832_v12 = vld [vmem:[%s4176_s13 + $0x130] sm:$0xf0] }
 0x184   :  { %v954_v13 = vpop.f32.mrf.mxu3 }
 0x185   :  { %v1460_v13 = vunpack.c.l.b16 %v1258_v10  ;;  %v2438_v10 = vld [vmem:[%s4176_s13] sm:$0xf] }
 0x200   :  { %v1015_v20 = vpop.f32.mrf.mxu0 }
 0x201   :  { %v1016_v21 = vadd.f32 %v2852_v19, %v1015_v20  ;;  %v1523_v19 = vpack.c.b16 %v1460_v13, %v1460_v13  ;;  %v2639_v20 = vor.u32 %v2843_v14, %v2636_v15  ;;  %v2798_v14 = vld [vmem:[%s4176_s13 + $0x20] sm:$0xf0]  ;;  %v2808_v15 = vld [vmem:[%s4176_s13 + $0x74] sm:$0xf] }
 0x203   :  { %v1019_v22 = vmax.f32 %v1016_v21, 0.0  ;;  %v1524_v21 = vpack.c.b16 %v1461_v16, %v1461_v16  ;;  %v1590_v25 = vsel %vm926_vm1, %v1523_v19, 0  ;;  %v2496_v16 = vld [vmem:[%s4176_s13 + $0x8c] sm:$0xf0]  ;;  %v2830_v19 = vld [vmem:[%s4176_s13 + $0x124] sm:$0xf] }
 0x204   :  { %1630 = vmatpush.bf16.msrb.mxu0 %v1590_v25  ;;  %v2499_v18 = vor.u32 %v2808_v15, %v2496_v16  ;;  %v2801_v25 = vld [vmem:[%s4176_s13 + $0x3c] sm:$0xf]  ;;  %v2622_v15 = vld [vmem:[%s4176_s13 + $0x160] sm:$0xf] }
 0x205   :  { %v1024_v23 = vpack.c.bf16 %v1019_v22, %v1019_v22  ;;  %v2579_v22 = vor.u32 %v2832_v12, %v2578_v9  ;;  %v1593_v29 = vsel %vm926_vm1, %v1524_v21, 0  ;;  %v2619_v9 = vor.u32 %v2837_v7, %v2616_v8  ;;  %v2446_v12 = vld [vmem:[%s4176_s13 + $0x8] sm:$0xf]  ;;  %v3919_v21 = vld [vmem:[%s4176_s13 + $0x1d0] sm:$0x11] }
 0x206   :  { %1656 = vmatpush.bf16.msrb.mxu1 %v1593_v29  ;;  %v2447_v17 = vor.u32 %v2798_v14, %v2446_v12  ;;  %v2560_v29 = vld [vmem:[%s4176_s13 + $0x104] sm:$0xf0]  ;;  %v1465_v4 = vunpack.c.h.b16 %v3919_v21  ;;  %v2835_v12 = vld [vmem:[%s4176_s13 + $0x148] sm:$0xf0]  ;;  %v2841_v16 = vld [vmem:[%s4176_s13 + $0x178] sm:$0xf0] }
 0x207   :  { %2396 = vmatmul.msk.bf16.vlgmr.msra.gmra.mxu2 %vm1037_vm6, %v1024_v23  ;;  %v2836_v23 = vld [vmem:[%s4176_s13 + $0x154] sm:$0xf]  ;;  %1612 = vmatpush.bf16.msrb.mxu3 %v2579_v22  ;;  %v2563_v32 = vor.u32 %v2823_v28, %v2560_v29  ;;  %v2546_v28 = vld [vmem:[%s4176_s13 + $0xc0] sm:$0xf]  ;;  %v2821_v29 = vld [vmem:[%s4176_s13 + $0xd8] sm:$0xf0] }
 0x208   :  { %v1017_v24 = vpop.f32.mrf.mxu0  ;;  %1662 = vmatpush.bf16.msra.mxu2 %v2643_v5  ;;  %1636 = vmatpush.bf16.msra.mxu0 %v2639_v20  ;;  %v2475_v5 = vor.u32 %v2805_v2, %v2474_v30  ;;  %v2588_v20 = vld [vmem:[%s4176_s13 + $0x13c] sm:$0xf0]  ;;  %v2842_v30 = vld [vmem:[%s4176_s13 + $0x180] sm:$0xf0] }
 0x209   :  { %v2608_v24 = vld [vmem:[%s4176_s13 + $0x16c] sm:$0xf0]  ;;  %v2591_v22 = vor.u32 %v2830_v19, %v2588_v20  ;;  %v2631_v8 = vor.u32 %v2842_v30, %v2630_v43  ;;  %v2574_v19 = vld [vmem:[%s4176_s13 + $0xf8] sm:$0xf]  ;;  %v2828_v20 = vld [vmem:[%s4176_s13 + $0x110] sm:$0xf0] }
 0x20a   :  { %v2611_v33 = vor.u32 %v2836_v23, %v2608_v24  ;;  %v1464_v23 = vunpack.c.l.b16 %v3919_v21 }
 0x20b   :  { %1613 = vmatpush.bf16.msrb.mxu3 %v2551_v34  ;;  %v2794_v34 = vld [vmem:[%s4176_s13 + $0x4] sm:$0xf] }
 0x20c   :  { %1663 = vmatpush.bf16.msra.mxu2 %v2615_v11  ;;  %1637 = vmatpush.bf16.msra.mxu0 %v2611_v33  ;;  %v2797_v11 = vld [vmem:[%s4176_s13 + $0x18] sm:$0xf0]  ;;  %v1527_v24 = vpack.c.b16 %v1464_v23, %v1464_v23  ;;  %v1259_v33 = vld [vmem:[%s4176_s13 + $0x1c8] sm:$0x11] }
 0x20d   :  { %v2439_v13 = vor.u32 %v2797_v11, %v2438_v10  ;;  %v1462_v36 = vunpack.c.l.b16 %v1259_v33  ;;  %v2602_v11 = vld [vmem:[%s4176_s13 + $0x130] sm:$0xf]  ;;  %v2594_v23 = vld [vmem:[%s4176_s13 + $0x128] sm:$0xf] }
 0x20e   :  { %v1602_v31 = vsel %vm926_vm1, %v1527_v24, 0  ;;  %v2834_v24 = vld [vmem:[%s4176_s13 + $0x140] sm:$0xf0] }
 0x20f   :  { %1614 = vmatpush.bf16.msrb.mxu3 %v2523_v45  ;;  %v2809_v45 = vld [vmem:[%s4176_s13 + $0x7c] sm:$0xf] }
 0x210   :  { %1664 = vmatpush.bf16.msra.mxu2 %v2587_v26  ;;  %1638 = vmatpush.bf16.msra.mxu0 %v2583_v44  ;;  %v2468_v26 = vld [vmem:[%s4176_s13 + $0x54] sm:$0xf0] }
 0x211   :  { %v2471_v27 = vor.u32 %v2801_v25, %v2468_v26  ;;  %v2575_v25 = vor.u32 %v2828_v20, %v2574_v19  ;;  %v2845_v26 = vld [vmem:[%s4176_s13 + $0x19c] sm:$0xf]  ;;  %v4151_v20 = vld [vmem:[%s4177_s14] sm:$0xff] }
 0x214   :  { %1665 = vmatpush.bf16.msra.mxu2 %v2559_v38  ;;  %v2443_v38 = vor.u32 %v2794_v34, %v2440_v35  ;;  %v2547_v35 = vor.u32 %v2821_v29, %v2546_v28 }
 0x28a   :  { %v1054_v48 = vpop.f32.mrf.mxu2 }
 0x28b   :  { %v1055_v49 = vadd.f32 %v2853_v47, %v1054_v48  ;;  %v2552_v47 = vld [vmem:[%s4176_s13 + $0xfc] sm:$0xf0]  ;;  %v2531_v48 = vor.u32 %v2819_v42, %v2530_v41  ;;  %v2535_v41 = vor.u32 %v2816_v39, %v2532_v40  ;;  %v1525_v42 = vpack.c.b16 %v1462_v36, %v1462_v36  ;;  %v2838_v36 = vld [vmem:[%s4176_s13 + $0x164] sm:$0xf]  ;;  %v2518_v39 = vld [vmem:[%s4176_s13 + $0x88] sm:$0xf] }
 0x28c   :  { %v2555_v54 = vor.u32 %v2822_v46, %v2552_v47  ;;  %v2504_v46 = vld [vmem:[%s4176_s13 + $0x94] sm:$0xf0]  ;;  %v2814_v40 = vld [vmem:[%s4176_s13 + $0xa0] sm:$0xf0] }
 0x28d   :  { %v1058_v50 = vmax.f32 %v1055_v49, 0.0  ;;  %v2494_v49 = vld [vmem:[%s4176_s13 + $0x70] sm:$0xf]  ;;  %1666 = vmatpush.bf16.msra.mxu2 %v2531_v48  ;;  %v1596_v44 = vsel %vm926_vm1, %v1525_v42, 0  ;;  %v2507_v47 = vor.u32 %v2809_v45, %v2504_v46  ;;  %v2802_v48 = vld [vmem:[%s4176_s13 + $0x44] sm:$0xf]  ;;  %v2519_v46 = vor.u32 %v2814_v40, %v2518_v39 }
 0x28e   :  { %1639 = vmatpush.bf16.msra.mxu0 %v2555_v54  ;;  %v2538_v42 = vld [vmem:[%s4176_s13 + $0xb8] sm:$0xf] }
 0x28f   :  { %v1063_v52 = vpack.c.bf16 %v1058_v50, %v1058_v50  ;;  %v2811_v50 = vld [vmem:[%s4176_s13 + $0x88] sm:$0xf0] }
 0x290   :  { %v2495_v55 = vor.u32 %v2811_v50, %v2494_v49  ;;  %v2476_v49 = vld [vmem:[%s4176_s13 + $0x5c] sm:$0xf0] }
 0x291   :  { %2401 = vmatmul.msk.bf16.vlgmr.msra.gmra.mxu3 %vm1037_vm6, %v1063_v52  ;;  %v2502_v52 = vld [vmem:[%s4176_s13 + $0x78] sm:$0xf]  ;;  %v2479_v50 = vor.u32 %v2802_v48, %v2476_v49  ;;  %v2596_v48 = vld [vmem:[%s4176_s13 + $0x144] sm:$0xf0]  ;;  %v2490_v49 = vld [vmem:[%s4176_s13 + $0x50] sm:$0xf] }
 0x292   :  { %v1056_v53 = vpop.f32.mrf.mxu2  ;;  %1615 = vmatpush.bf16.msrb.mxu3 %v2495_v55  ;;  %1640 = vmatpush.bf16.msra.mxu0 %v2527_v6  ;;  %v1105_v55 = vld [vmem:[%s4175_s12] sm:$0x3]  ;;  %v2848_v6 = vld [vmem:[%s4176_s13 + $0x1b0] sm:$0xf0] }
 0x293   :  { %v2812_v53 = vld [vmem:[%s4176_s13 + $0x90] sm:$0xf0] }
 0x294   :  { %v2503_v56 = vor.u32 %v2812_v53, %v2502_v52  ;;  %v2795_v52 = vld [vmem:[%s4176_s13 + $0xc] sm:$0xf]  ;;  %v2448_v53 = vld [vmem:[%s4176_s13 + $0x24] sm:$0xf0] }
 0x295   :  { %v2451_v54 = vor.u32 %v2795_v52, %v2448_v53  ;;  %v2510_v53 = vld [vmem:[%s4176_s13 + $0x80] sm:$0xf] }
 0x296   :  { %1667 = vmatpush.bf16.msra.mxu2 %v2503_v56  ;;  %1616 = vmatpush.bf16.msrb.mxu3 %v2467_v37  ;;  %v1108_v56 = vperm.slane %v1105_v55, 0 }
 0x297   :  { %1641 = vmatpush.bf16.msra.mxu0 %v2499_v18  ;;  %v2603_v18 = vor.u32 %v2835_v12, %v2602_v11 }
 0x29a   :  { %1668 = vmatpush.bf16.msra.mxu2 %v2475_v5  ;;  %1617 = vmatpush.bf16.msrb.mxu3 %v2439_v13  ;;  %v2650_v5 = vld [vmem:[%s4176_s13 + $0x198] sm:$0xf] }
 0x29b   :  { %1642 = vmatpush.bf16.msra.mxu0 %v2471_v27  ;;  %v2651_v13 = vor.u32 %v2848_v6, %v2650_v5  ;;  %v2652_v27 = vld [vmem:[%s4176_s13 + $0x1b4] sm:$0xf0]  ;;  %v2799_v5 = vld [vmem:[%s4176_s13 + $0x28] sm:$0xf0] }
 0x29c   :  { %v2655_v34 = vor.u32 %v2845_v26, %v2652_v27 }
 0x29e   :  { %1669 = vmatpush.bf16.msra.mxu2 %v2447_v17  ;;  %1682 = vmatpush.bf16.msra.mxu3 %v1596_v44  ;;  %v2820_v44 = vld [vmem:[%s4176_s13 + $0xd0] sm:$0xf0] }
 0x29f   :  { %1643 = vmatpush.bf16.msra.mxu0 %v2443_v38  ;;  %v2624_v38 = vld [vmem:[%s4176_s13 + $0x17c] sm:$0xf0]  ;;  %v2539_v52 = vor.u32 %v2820_v44, %v2538_v42 }
 0x2a0   :  { %v2627_v45 = vor.u32 %v2838_v36, %v2624_v38 }
 0x314   :  { %v1091_v59 = vpop.f32.mrf.mxu3 }
 0x315   :  { %v1092_v60 = vadd.f32 %v2854_v57, %v1091_v59  ;;  %v1463_v57 = vunpack.c.h.b16 %v1259_v33  ;;  %v2827_v33 = vld [vmem:[%s4176_s13 + $0x108] sm:$0xf0] }
 0x317   :  { %v1095_v63 = vmax.f32 %v1092_v60, 0.0 }
 0x319   :  { %v1106_v1 = vpack.c.bf16 %v1095_v63, %v1095_v63  ;;  %v1526_v63 = vpack.c.b16 %v1463_v57, %v1463_v57  ;;  %v2824_v57 = vld [vmem:[%s4176_s13 + $0xf4] sm:$0xf] }
 0x31b   :  { %2434 = vmatmul.msk.bf16.vlgmr.msra.gmra.mxu1 %vm998_vm5, %v1106_v1  ;;  %2435 = vmatmul.msk.bf16.vlgmr.msrb.gmra.mxu2 %vm998_vm5, %v1106_v1  ;;  %v1109_v1 = vperm.slane %v1105_v55, 1  ;;  %v1599_v37 = vsel %vm926_vm1, %v1526_v63, 0 }
 0x31c   :  { %v1093_v51 = vpop.f32.mrf.mxu3  ;;  %1688 = vmatpush.bf16.msra.mxu1 %v2647_v0  ;;  %1734 = vmatpush.bf16.msrb.mxu2 %v1602_v31  ;;  %v2595_v31 = vor.u32 %v2834_v24, %v2594_v23 }
 0x31d   :  { %v2659_v51 = vor.u32 %v2849_v62, %v2658_v61  ;;  %v2800_v61 = vld [vmem:[%s4176_s13 + $0x30] sm:$0xf0]  ;;  %v1261_v62 = vld [vmem:[%s4176_s13 + $0x1d8] sm:$0x1] }
 0x31e   :  { %v1466_v30 = vunpack.c.l.b16 %v1261_v62 }
 0x320   :  { %1689 = vmatpush.bf16.msra.mxu1 %v2619_v9  ;;  %v1528_v9 = vpack.c.b16 %v1465_v4, %v1465_v4 }
 0x322   :  { %v1605_v17 = vsel %vm926_vm1, %v1528_v9, 0  ;;  %v2512_v9 = vld [vmem:[%s4176_s13 + $0x9c] sm:$0xf0] }
 0x324   :  { %1690 = vmatpush.bf16.msra.mxu1 %v2591_v22  ;;  %v2623_v22 = vor.u32 %v2841_v16, %v2622_v15  ;;  %v2484_v15 = vld [vmem:[%s4176_s13 + $0x64] sm:$0xf0] }
 0x328   :  { %1691 = vmatpush.bf16.msra.mxu1 %v2563_v32  ;;  %v2566_v32 = vld [vmem:[%s4176_s13 + $0xf0] sm:$0xf] }
 0x32c   :  { %1692 = vmatpush.bf16.msra.mxu1 %v2535_v41  ;;  %v2567_v41 = vor.u32 %v2827_v33, %v2566_v32 }
 0x330   :  { %1693 = vmatpush.bf16.msra.mxu1 %v2507_v47  ;;  %v2831_v47 = vld [vmem:[%s4176_s13 + $0x12c] sm:$0xf] }
 0x331   :  { %v2599_v55 = vor.u32 %v2831_v47, %v2596_v48 }
 0x334   :  { %1694 = vmatpush.bf16.msra.mxu1 %v2479_v50  ;;  %v2807_v50 = vld [vmem:[%s4176_s13 + $0x68] sm:$0xf0] }
 0x338   :  { %1695 = vmatpush.bf16.msra.mxu1 %v2451_v54  ;;  %v2813_v54 = vld [vmem:[%s4176_s13 + $0x98] sm:$0xf0] }
 0x339   :  { %v2511_v63 = vor.u32 %v2813_v54, %v2510_v53 }
 0x398   :  { %v1175_v59 = vpop.f32.mrf.mxu1 }
 0x399   :  { %v1176_v60 = vadd.f32 %v1175_v59, %v1108_v56  ;;  %v2491_v56 = vor.u32 %v2807_v50, %v2490_v49  ;;  %v2568_v59 = vld [vmem:[%s4176_s13 + $0x10c] sm:$0xf0] }
 0x39b   :  { %v1192_v0 = vmax.f32 %v1176_v60, 0.0  ;;  %v2462_v60 = vld [vmem:[%s4176_s13 + $0x18] sm:$0xf] }
 0x39c   :  { %v2463_v43 = vor.u32 %v2800_v61, %v2462_v60  ;;  %v1269_v61 = vperm.slane %v4151_v20, 3 }
 0x39d   :  { %v3978_v3 = vpack.c.bf16 %v1192_v0, %v1192_v0  ;;  %v2482_v0 = vld [vmem:[%s4176_s13 + $0x48] sm:$0xf] }
 0x39e   :  { %v1188_v2 = vpop.f32.mrf.mxu2 }
 0x39f   :  { %v1189_v58 = vadd.f32 %v1188_v2, %v1109_v1  ;;  %1618 = vmatmul.bf16.vlgmr.msrb.gmra.mxu3 %v3978_v3  ;;  %1670 = vmatmul.bf16.vlgmr.msra.gmra.mxu2 %v3978_v3  ;;  %v2806_v1 = vld [vmem:[%s4176_s13 + $0x60] sm:$0xf0]  ;;  %v2540_v2 = vld [vmem:[%s4176_s13 + $0xd4] sm:$0xf0] }
 0x3a0   :  { %v1177_v7 = vpop.f32.mrf.mxu1  ;;  %1766 = vmatpush.bf16.msra.mxu2 %v2659_v51  ;;  %1708 = vmatpush.bf16.msrb.mxu3 %v1599_v37  ;;  %v2571_v51 = vor.u32 %v2824_v57, %v2568_v59  ;;  %v2817_v37 = vld [vmem:[%s4176_s13 + $0xbc] sm:$0xf]  ;;  %v2483_v4 = vor.u32 %v2806_v1, %v2482_v0 }
 0x3a1   :  { %v1193_v10 = vmax.f32 %v1189_v58, 0.0  ;;  %v2454_v58 = vld [vmem:[%s4176_s13 + $0x10] sm:$0xf]  ;;  %v2543_v6 = vor.u32 %v2817_v37, %v2540_v2  ;;  %v1529_v7 = vpack.c.b16 %v1466_v30, %v1466_v30 }
 0x3a3   :  { %v4002_v14 = vpack.c.bf16 %v1193_v10, %v1193_v10  ;;  %v2455_v10 = vor.u32 %v2799_v5, %v2454_v58  ;;  %v1608_v12 = vsel %vm926_vm1, %v1529_v7, 0 }
 0x3a4   :  { %1767 = vmatpush.bf16.msra.mxu2 %v2631_v8  ;;  %v2810_v8 = vld [vmem:[%s4176_s13 + $0x84] sm:$0xf] }
 0x3a5   :  { %2660 = vmatmul.msk.bf16.vlgmr.msrb.gmra.mxu0 %vm922_vm2, %v4002_v14  ;;  %2661 = vmatmul.msk.bf16.vlgmr.msrb.gmra.mxu1 %vm922_vm2, %v4002_v14  ;;  %v2515_v11 = vor.u32 %v2810_v8, %v2512_v9 }
 0x3a6   :  { %v1190_v21 = vpop.f32.mrf.mxu2  ;;  %1714 = vmatpush.bf16.msrb.mxu0 %v2651_v13  ;;  %1760 = vmatpush.bf16.msrb.mxu1 %v1605_v17  ;;  %v2803_v13 = vld [vmem:[%s4176_s13 + $0x4c] sm:$0xf]  ;;  %v2796_v17 = vld [vmem:[%s4176_s13 + $0x14] sm:$0xf] }
 0x3a7   :  { %v2487_v16 = vor.u32 %v2803_v13, %v2484_v15  ;;  %v1266_v21 = vperm.slane %v4151_v20, 0 }
 0x3a8   :  { %1768 = vmatpush.bf16.msra.mxu2 %v2603_v18  ;;  %v2456_v18 = vld [vmem:[%s4176_s13 + $0x2c] sm:$0xf0]  ;;  %s2909_s13 = smov [#allocation2]  }
 0x3a9   :  { %v2459_v19 = vor.u32 %v2796_v17, %v2456_v18  ;;  %s1937_s14 = sshll.u32 %s2909_s13, 4  ;;  %s1938_s14 = int_to_ptr.vmem [resolvable:$true] %s1937_s14 }
 0x3aa   :  { %1715 = vmatpush.bf16.msrb.mxu0 %v2623_v22 }
 0x3ac   :  { %1769 = vmatpush.bf16.msra.mxu2 %v2575_v25 }
 0x3ae   :  { %1716 = vmatpush.bf16.msrb.mxu0 %v2595_v31 }
 0x3af   :  { %2662 = vmatmul.msk.bf16.vlgmr.msra.gmra.mxu3 %vm922_vm2, %v4002_v14  ;;  %2664 = vmatmul.msk.bf16.vlgmr.msrb.gmra.mxu2 %vm922_vm2, %v4002_v14 }
 0x3b0   :  { %1740 = vmatpush.bf16.msra.mxu3 %v2655_v34  ;;  %1770 = vmatpush.bf16.msra.mxu2 %v2547_v35  ;;  %v1267_v34 = vperm.slane %v4151_v20, 1 }
 0x3b2   :  { %1717 = vmatpush.bf16.msrb.mxu0 %v2567_v41 }
 0x3b4   :  { %1741 = vmatpush.bf16.msra.mxu3 %v2627_v45  ;;  %1771 = vmatpush.bf16.msra.mxu2 %v2519_v46 }
 0x3b5   :  { %1644 = vmatmul.bf16.vlgmr.msra.gmra.mxu0 %v3978_v3  ;;  %1696 = vmatmul.bf16.vlgmr.msra.gmra.mxu1 %v3978_v3 }
 0x3b6   :  { %1718 = vmatpush.bf16.msrb.mxu0 %v2539_v52 }
 0x3b8   :  { %1742 = vmatpush.bf16.msra.mxu3 %v2599_v55  ;;  %1772 = vmatpush.bf16.msra.mxu2 %v2491_v56 }
 0x3ba   :  { %1719 = vmatpush.bf16.msrb.mxu0 %v2511_v63 }
 0x3bc   :  { %1743 = vmatpush.bf16.msra.mxu3 %v2571_v51  ;;  %1773 = vmatpush.bf16.msra.mxu2 %v2463_v43  ;;  %v1270_v43 = vperm.slane %v4151_v20, 4 }
 0x3be   :  { %1720 = vmatpush.bf16.msrb.mxu0 %v2483_v4 }
 0x3bf   :  { %2663 = vmatmul.msk.bf16.vlgmr.msrb.gmra.mxu3 %vm922_vm2, %v4002_v14  ;;  %1774 = vmatmul.bf16.vlgmr.msra.gmra.mxu2 %v3978_v3 }
 0x3c0   :  { %1744 = vmatpush.bf16.msra.mxu3 %v2543_v6 }
 0x3c2   :  { %1721 = vmatpush.bf16.msrb.mxu0 %v2455_v10 }
 0x3c4   :  { %1745 = vmatpush.bf16.msra.mxu3 %v2515_v11 }
 0x3c5   :  { %1722 = vmatmul.bf16.vlgmr.msrb.gmra.mxu0 %v3978_v3  ;;  %2665 = vmatmul.msk.bf16.vlgmr.msrb.gmra.mxu1 %vm922_vm2, %v4002_v14 }
 0x3c6   :  { %1786 = vmatpush.bf16.msra.mxu0 %v1608_v12 }
 0x3c8   :  { %1746 = vmatpush.bf16.msra.mxu3 %v2487_v16 }
 0x3cc   :  { %1747 = vmatpush.bf16.msra.mxu3 %v2459_v19 }
 0x3cf   :  { %1748 = vmatmul.bf16.vlgmr.msra.gmra.mxu3 %v3978_v3 }
 0x3d5   :  { %2666 = vmatmul.msk.bf16.vlgmr.msra.gmra.mxu0 %vm922_vm2, %v4002_v14  ;;  %v1268_v14 = vperm.slane %v4151_v20, 2 }
 0x422   :  { %v1619_v22 = vpop.f32.mrf.mxu3  ;;  %v1632_v23 = vpop.f32.mrf.mxu0 }
 0x423   :  { %v1620_v24 = vadd.f32 %v1619_v22, %v1266_v21  ;;  %v1658_v25 = vpop.f32.mrf.mxu1  ;;  %v1671_v26 = vpop.f32.mrf.mxu2 }
 0x424   :  { %v1672_v36 = vadd.f32 %v1671_v26, %v1268_v14 }
 0x425   :  { %v1633_v27 = vadd.f32 %v1632_v23, %v1620_v24 }
 0x427   :  { %v2667_v28 = vmul.f32 -1.442695, %v1633_v27 }
 0x429   :  { %2855 = vpow2.f32 %v2667_v28 }
 0x42a   :  { %v1621_v29 = vpop.f32.mrf.mxu3  ;;  %v1634_v3 = vpop.f32.mrf.mxu0 }
 0x42b   :  { %v1660_v31 = vpop.f32.mrf.mxu1  ;;  %v1673_v32 = vpop.f32.mrf.mxu2 }
 0x42f   :  { %v2856_v33 = vpop.eup %2855 }
 0x430   :  { %v1813_v35 = vadd.f32 1.0, %v2856_v33  ;;  %v1272_v33 = vperm.slane %v4151_v20, 6 }
 0x432   :  { %2857 = vrcp.f32 %v1813_v35  ;;  %v1645_v38 = vpop.f32.mrf.mxu0  ;;  %v1684_v39 = vpop.f32.mrf.mxu3  ;;  %v1831_v56 = vand.u32 2147483648, %v1813_v35  ;;  %v1829_v60 = vand.u32 2147483647, %v1813_v35  ;;  %vm1825_vm8 = vweird.f32 %v1813_v35 }
 0x433   :  { %v1646_v40 = vadd.f32 %v1645_v38, %v1267_v34  ;;  %v1685_v41 = vadd.f32 %v1684_v39, %v1672_v36  ;;  %v1697_v42 = vpop.f32.mrf.mxu1  ;;  %v1736_v44 = vpop.f32.mrf.mxu2 }
 0x434   :  { %v1832_v1 = vor.u32 1.1754944e-38, %v1831_v56  ;;  %vm1830_vm10 = vcmp.eq.f32.partialorder %v1829_v60, 8.507059e+37  ;;  %v1698_v37 = vadd.f32 %v1697_v42, %v1269_v61 }
 0x435   :  { %v1659_v45 = vadd.f32 %v1658_v25, %v1646_v40  ;;  %v2669_v46 = vmul.f32 -1.442695, %v1685_v41  ;;  %v1271_v40 = vperm.slane %v4151_v20, 5 }
 0x437   :  { %v2668_v47 = vmul.f32 -1.442695, %v1659_v45  ;;  %2859 = vpow2.f32 %v2669_v46 }
 0x438   :  { %v2858_v48 = vpop.eup %2857 }
 0x439   :  { %v1821_v49 = vmul.f32 %v2858_v48, %v1813_v35  ;;  %2861 = vpow2.f32 %v2668_v47  ;;  %vm1826_vm7 = vweird.f32 %v2858_v48 }
 0x43a   :  { %v1647_v50 = vpop.f32.mrf.mxu0  ;;  %v1686_v52 = vpop.f32.mrf.mxu3  ;;  %vm1827_vm9 = vmor %vm1825_vm8, %vm1826_vm7 }
 0x43b   :  { %v1822_v53 = vsub.f32 1.0, %v1821_v49  ;;  %v1699_v54 = vpop.f32.mrf.mxu1  ;;  %v1738_v55 = vpop.f32.mrf.mxu2 }
 0x43d   :  { %v2860_v57 = vpop.eup %2859  ;;  %v1823_v59 = vmul.f32 %v2858_v48, %v1822_v53 }
 0x43e   :  { %v1815_v62 = vadd.f32 1.0, %v2860_v57 }
 0x43f   :  { %v2862_v63 = vpop.eup %2861  ;;  %v1824_v0 = vadd.f32 %v2858_v48, %v1823_v59 }
 0x440   :  { %v1814_v51 = vadd.f32 1.0, %v2862_v63  ;;  %2863 = vrcp.f32 %v1815_v62  ;;  %v1861_v18 = vand.u32 2147483648, %v1815_v62  ;;  %v1859_v24 = vand.u32 2147483647, %v1815_v62 }
 0x441   :  { %v1828_v30 = vsel %vm1827_vm9, %v2858_v48, %v1824_v0  ;;  %vm1855_vm12 = vweird.f32 %v1815_v62 }
 0x442   :  { %v1833_v2 = vsel %vm1830_vm10, %v1832_v1, %v1828_v30  ;;  %2865 = vrcp.f32 %v1814_v51  ;;  %v1710_v4 = vpop.f32.mrf.mxu3  ;;  %v1723_v58 = vpop.f32.mrf.mxu0  ;;  %v1846_v27 = vand.u32 2147483648, %v1814_v51  ;;  %v1844_v3 = vand.u32 2147483647, %v1814_v51 }
 0x443   :  { %1925 = vst [vmem:[#allocation2] sm:$0xff] %v1833_v2  ;;  %v1711_v5 = vadd.f32 %v1710_v4, %v1698_v37  ;;  %v1762_v6 = vpop.f32.mrf.mxu1  ;;  %v1775_v7 = vpop.f32.mrf.mxu2  ;;  %v1724_v8 = vadd.f32 %v1723_v58, %v1270_v43  ;;  %v1862_v32 = vor.u32 1.1754944e-38, %v1861_v18  ;;  %vm1840_vm15 = vweird.f32 %v1814_v51 }
 0x444   :  { %vm1860_vm0 = vcmp.eq.f32.partialorder %v1859_v24, 8.507059e+37  ;;  %v1847_v38 = vor.u32 1.1754944e-38, %v1846_v27  ;;  %vm1845_vm2 = vcmp.eq.f32.partialorder %v1844_v3, 8.507059e+37  ;;  %v1776_v45 = vadd.f32 %v1775_v7, %v1272_v33 }
 0x445   :  { %v2670_v9 = vmul.f32 -1.442695, %v1711_v5  ;;  %v1737_v11 = vadd.f32 %v1736_v44, %v1724_v8 }
 0x446   :  { %v2864_v10 = vpop.eup %2863 }
 0x447   :  { %v1851_v12 = vmul.f32 %v2864_v10, %v1815_v62  ;;  %2867 = vpow2.f32 %v2670_v9  ;;  %v2671_v15 = vmul.f32 -1.442695, %v1737_v11  ;;  %vm1856_vm11 = vweird.f32 %v2864_v10 }
 0x448   :  { %v2866_v13 = vpop.eup %2865  ;;  %vm1857_vm14 = vmor %vm1855_vm12, %vm1856_vm11 }
 0x449   :  { %v1836_v16 = vmul.f32 %v2866_v13, %v1814_v51  ;;  %v1852_v17 = vsub.f32 1.0, %v1851_v12  ;;  %2869 = vpow2.f32 %v2671_v15  ;;  %vm1841_vm13 = vweird.f32 %v2866_v13 }
 0x44a   :  { %v1712_v19 = vpop.f32.mrf.mxu3  ;;  %v1725_v21 = vpop.f32.mrf.mxu0  ;;  %vm1842_vm1 = vmor %vm1840_vm15, %vm1841_vm13 }
 0x44b   :  { %v1837_v22 = vsub.f32 1.0, %v1836_v16  ;;  %v1853_v23 = vmul.f32 %v2864_v10, %v1852_v17  ;;  %v1764_v25 = vpop.f32.mrf.mxu1  ;;  %v1777_v26 = vpop.f32.mrf.mxu2 }
 0x44d   :  { %v2868_v28 = vpop.eup %2867  ;;  %v1838_v29 = vmul.f32 %v2866_v13, %v1837_v22  ;;  %v1854_v31 = vadd.f32 %v2864_v10, %v1853_v23 }
 0x44e   :  { %v1816_v14 = vadd.f32 1.0, %v2868_v28 }
 0x44f   :  { %v1839_v34 = vadd.f32 %v2866_v13, %v1838_v29  ;;  %v1858_v35 = vsel %vm1857_vm14, %v2864_v10, %v1854_v31  ;;  %v2870_v36 = vpop.eup %2869 }
 0x450   :  { %v1863_v39 = vsel %vm1860_vm0, %v1862_v32, %v1858_v35  ;;  %2871 = vrcp.f32 %v1816_v14  ;;  %v1817_v42 = vadd.f32 1.0, %v2870_v36  ;;  %v1876_v57 = vand.u32 2147483648, %v1816_v14 }
 0x451   :  { %v1843_v41 = vsel %vm1842_vm1, %v2866_v13, %v1839_v34  ;;  %1927 = vst [vmem:[#allocation2 + $0x10] sm:$0xff] %v1863_v39  ;;  %v1874_v63 = vand.u32 2147483647, %v1816_v14  ;;  %vm1870_vm4 = vweird.f32 %v1816_v14 }
 0x452   :  { %v1848_v44 = vsel %vm1845_vm2, %v1847_v38, %v1843_v41  ;;  %v1749_v46 = vpop.f32.mrf.mxu3  ;;  %v1788_v47 = vpop.f32.mrf.mxu0  ;;  %2873 = vrcp.f32 %v1817_v42  ;;  %v1891_v51 = vand.u32 2147483648, %v1817_v42  ;;  %v1877_v30 = vor.u32 1.1754944e-38, %v1876_v57 }
 0x453   :  { %1926 = vst [vmem:[#allocation2 + $0x8] sm:$0xff] %v1848_v44  ;;  %v1750_v48 = vadd.f32 %v1749_v46, %v1271_v40  ;;  %v1789_v49 = vadd.f32 %v1788_v47, %v1776_v45  ;;  %v1889_v2 = vand.u32 2147483647, %v1817_v42  ;;  %vm1875_vm7 = vcmp.eq.f32.partialorder %v1874_v63, 8.507059e+37 }
 0x454   :  { %vm1885_vm8 = vweird.f32 %v1817_v42  ;;  %v1892_v8 = vor.u32 1.1754944e-38, %v1891_v51 }
 0x455   :  { %v1763_v52 = vadd.f32 %v1762_v6, %v1750_v48  ;;  %v2673_v53 = vmul.f32 -1.442695, %v1789_v49  ;;  %vm1890_vm10 = vcmp.eq.f32.partialorder %v1889_v2, 8.507059e+37 }
 0x456   :  { %v2872_v50 = vpop.eup %2871 }
 0x457   :  { %v1866_v54 = vmul.f32 %v2872_v50, %v1816_v14  ;;  %v2672_v55 = vmul.f32 -1.442695, %v1763_v52  ;;  %2875 = vpow2.f32 %v2673_v53  ;;  %vm1871_vm3 = vweird.f32 %v2872_v50 }
 0x458   :  { %v2874_v56 = vpop.eup %2873  ;;  %vm1872_vm5 = vmor %vm1870_vm4, %vm1871_vm3 }
 0x459   :  { %v1867_v20 = vsub.f32 1.0, %v1866_v54  ;;  %v1881_v59 = vmul.f32 %v2874_v56, %v1817_v42  ;;  %2877 = vpow2.f32 %v2672_v55  ;;  %vm1886_vm6 = vweird.f32 %v2874_v56 }
 0x45a   :  { %v1751_v60 = vpop.f32.mrf.mxu3  ;;  %v1790_v61 = vpop.f32.mrf.mxu0  ;;  %vm1887_vm9 = vmor %vm1885_vm8, %vm1886_vm6 }
 0x45b   :  { %v1868_v62 = vmul.f32 %v2872_v50, %v1867_v20  ;;  %v1882_v0 = vsub.f32 1.0, %v1881_v59 }
 0x45d   :  { %v1869_v1 = vadd.f32 %v2872_v50, %v1868_v62  ;;  %v2876_v43 = vpop.eup %2875  ;;  %v1883_v37 = vmul.f32 %v2874_v56, %v1882_v0 }
 0x45e   :  { %v1819_v58 = vadd.f32 1.0, %v2876_v43 }
 0x45f   :  { %v1873_v4 = vsel %vm1872_vm5, %v2872_v50, %v1869_v1  ;;  %v2878_v5 = vpop.eup %2877  ;;  %v1884_v7 = vadd.f32 %v2874_v56, %v1883_v37 }
 0x460   :  { %v1878_v6 = vsel %vm1875_vm7, %v1877_v30, %v1873_v4  ;;  %v1818_v9 = vadd.f32 1.0, %v2878_v5  ;;  %2879 = vrcp.f32 %v1819_v58  ;;  %v1921_v18 = vand.u32 2147483648, %v1819_v58 }
 0x461   :  { %1928 = vst [vmem:[#allocation2 + $0x18] sm:$0xff] %v1878_v6  ;;  %v1888_v10 = vsel %vm1887_vm9, %v2874_v56, %v1884_v7  ;;  %v1919_v22 = vand.u32 2147483647, %v1819_v58  ;;  %vm1915_vm12 = vweird.f32 %v1819_v58 }
 0x462   :  { %v1893_v11 = vsel %vm1890_vm10, %v1892_v8, %v1888_v10  ;;  %2881 = vrcp.f32 %v1818_v9  ;;  %v1906_v23 = vand.u32 2147483648, %v1818_v9  ;;  %v1904_v25 = vand.u32 2147483647, %v1818_v9 }
 0x463   :  { %1929 = vst [vmem:[#allocation2 + $0x20] sm:$0xff] %v1893_v11  ;;  %v1922_v27 = vor.u32 1.1754944e-38, %v1921_v18  ;;  %vm1900_vm15 = vweird.f32 %v1818_v9  ;;  %vm1920_vm0 = vcmp.eq.f32.partialorder %v1919_v22, 8.507059e+37 }
 0x464   :  { %v1907_v3 = vor.u32 1.1754944e-38, %v1906_v23  ;;  %vm1905_vm2 = vcmp.eq.f32.partialorder %v1904_v25, 8.507059e+37 }
 0x466   :  { %v2880_v12 = vpop.eup %2879 }
 0x467   :  { %v1911_v13 = vmul.f32 %v2880_v12, %v1819_v58  ;;  %vm1916_vm11 = vweird.f32 %v2880_v12 }
 0x468   :  { %v2882_v15 = vpop.eup %2881  ;;  %vm1917_vm14 = vmor %vm1915_vm12, %vm1916_vm11 }
 0x469   :  { %v1896_v16 = vmul.f32 %v2882_v15, %v1818_v9  ;;  %v1912_v17 = vsub.f32 1.0, %v1911_v13  ;;  %vm1901_vm13 = vweird.f32 %v2882_v15 }
 0x46a   :  { %vm1902_vm1 = vmor %vm1900_vm15, %vm1901_vm13 }
 0x46b   :  { %v1897_v19 = vsub.f32 1.0, %v1896_v16  ;;  %v1913_v21 = vmul.f32 %v2880_v12, %v1912_v17 }
 0x46d   :  { %v1898_v24 = vmul.f32 %v2882_v15, %v1897_v19  ;;  %v1914_v26 = vadd.f32 %v2880_v12, %v1913_v21 }
 0x46f   :  { %v1899_v28 = vadd.f32 %v2882_v15, %v1898_v24  ;;  %v1918_v29 = vsel %vm1917_vm14, %v2880_v12, %v1914_v26 }
 0x470   :  { %v1923_v31 = vsel %vm1920_vm0, %v1922_v27, %v1918_v29 }
 0x471   :  { %v1903_v32 = vsel %vm1902_vm1, %v2882_v15, %v1899_v28  ;;  %1931 = vst [vmem:[#allocation2 + $0x30] sm:$0xff] %v1923_v31 }
 0x472   :  { %v1908_v14 = vsel %vm1905_vm2, %v1907_v3, %v1903_v32 }
 0x473   :  { %1930 = vst [vmem:[#allocation2 + $0x28] sm:$0xff] %v1908_v14 }
 0x474   :  { %1942 = dma.vmem_to_hbm [thread:$0]  %s1938_s14, 896, %s1940_s0, [#allocation3]  }
 0x475   :  { %2907 = dma.done.wait [#allocation3], 896  }
 0x476   :  { %2908 = vsyncadd [#allocation3], 4294966400 }
 0x477   :  { %1947 = vsyncpa [#allocation3], 1 }

</bundles_post_ra>
